<compile_context>
chip_gen: v6e
topology: v6e:2x2x1
jax: 0.10.0
libtpu: 0.0.40
codegen_flags: <defaults>
</compile_context>

<pallas_src>
import jax
import jax.numpy as jnp
from jax.experimental import pallas as pl
from jax.experimental.pallas import tpu as pltpu

BN_EPS = 1e-5        # nn.BatchNorm1d default eps
NORM_EPS = 1e-12     # F.normalize default eps
_WP_RESIDENT_BYTES = 4 << 20   # keep Wp resident in VMEM if it is at most this big


def _pick_tile(n, preferred, quantum):
    """Largest multiple of `quantum` that divides n and is <= preferred; else n."""
    c = min(preferred, n)
    c -= c % quantum
    while c >= quantum:
        if n % c == 0:
            return c
        c -= quantum
    return n


def _vmem_limit_bytes():
    """~75% of physical VMEM (leaves headroom; v7x has only 64 MiB per TC)."""
    try:
        cap = pltpu.get_tpu_info().vmem_capacity_bytes
    except Exception:
        cap = 64 << 20
    return int(cap) * 3 // 4


def _pick_tn(N, D, P, K_eff, tk, vmem_limit, wp_resident):
    """Largest multiple-of-16 divisor of N (<= 512) whose tiles fit the VMEM budget."""
    resident = (D * P + P * D) * 2 + (D * K_eff * 2 if wp_resident else 2 * D * tk * 2)

    def per_tn(tn):
        c1 = 2 * tn * D * 2 + 2 * tn * P * 2                  # call 1: x, h (bf16, x2 buf)
        if wp_resident:
            c2 = 2 * tn * P * 2 + 2 * tn * K_eff * 4          # call 2: h in, out f32
        else:
            c2 = 2 * tn * P * 2 + 2 * tn * tk * 4 + tn * D * 2
        return max(c1, c2)

    cap = int(vmem_limit * 0.6) - resident
    best = None
    for cand in range(16, min(N, 512) + 1, 16):
        if N % cand == 0 and per_tn(cand) <= cap:
            best = cand
    if best is not None:
        return best
    return _pick_tile(N, 256, 8)   # fallback for awkward batch sizes


# --------------------------- Call 1: Linear1 + BN partial stats ---------------------------
def _proj1_kernel(x_ref, w1_ref, b1_ref, h_ref, stats_ref):
    # h = x @ W1 + b1   (bf16 operands, f32 MXU accumulation)
    h = jnp.dot(x_ref[...], w1_ref[...],
                preferred_element_type=jnp.float32) + b1_ref[...]
    # Packed per-tile BatchNorm partials: row 0 = sum(h), row 1 = sum(h*h).
    stats_ref[...] = jnp.concatenate(
        [jnp.sum(h, axis=0, keepdims=True),
         jnp.sum(h * h, axis=0, keepdims=True)], axis=0)[None]
    h_ref[...] = h.astype(h_ref.dtype)


# --------------------------- Shared BN + ReLU + Linear2 + L2-normalize --------------------
def _bn_relu_fc2_normalize(h_raw, scale, shift, w2, b2):
    hn = jnp.maximum(h_raw.astype(jnp.float32) * scale + shift, 0.0)
    y = jnp.dot(hn.astype(jnp.bfloat16), w2,
                preferred_element_type=jnp.float32) + b2
    ssq = jnp.sum(y * y, axis=1, keepdims=True)
    inv = jax.lax.rsqrt(jnp.maximum(ssq, NORM_EPS * NORM_EPS))   # EUP rsqrt, no divide
    return (y * inv).astype(jnp.bfloat16)


# ----------- Call 2 (fused, Wp resident): BN + ReLU + Linear2 + normalize + prototypes ----
def _proj2_fused_kernel(h_ref, scale_ref, shift_ref, w2_ref, b2_ref, wp_ref, o_ref):
    yb = _bn_relu_fc2_normalize(h_ref[...], scale_ref[...], shift_ref[...],
                                w2_ref[...], b2_ref[...])
    o_ref[...] = jnp.dot(yb, wp_ref[...], preferred_element_type=jnp.float32)


# ----------- Call 2a/2b (split path for large K): y build, then streamed y @ Wp -----------
def _proj2a_kernel(h_ref, scale_ref, shift_ref, w2_ref, b2_ref, y_ref):
    y_ref[...] = _bn_relu_fc2_normalize(h_ref[...], scale_ref[...], shift_ref[...],
                                        w2_ref[...], b2_ref[...])


def _proj2b_kernel(y_ref, wp_ref, o_ref):
    o_ref[...] = jnp.dot(y_ref[...], wp_ref[...], preferred_element_type=jnp.float32)


@jax.jit
def swav_forward(x, params):
    """SwAV forward: prototypes(F.normalize(projection_head(x))).  Returns [N, K] f32."""
    N, D = x.shape
    P = params["w1"].shape[1]
    K = params["wp"].shape[1]

    # Pad prototype count to a lane-dense multiple of 128 (unmasked stores, clean K
    # tiling); padded columns are zero and are sliced off at the end.
    K_pad = ((K + 127) // 128) * 128
    wp = params["wp"]
    if K_pad != K:
        wp = jnp.pad(wp, ((0, 0), (0, K_pad - K)))

    wp_resident = D * K_pad * 2 <= _WP_RESIDENT_BYTES
    vmem_limit = _vmem_limit_bytes()
    tk = K_pad if wp_resident else _pick_tile(K_pad, 512, 128)
    tn = _pick_tn(N, D, P, K_pad, tk, vmem_limit, wp_resident)
    nt = N // tn
    kt = K_pad // tk

    xb = x.astype(jnp.bfloat16)

    def cparams(sem):
        return pltpu.CompilerParams(dimension_semantics=sem,
                                    vmem_limit_bytes=vmem_limit)

    # ---- Call 1: h = x @ W1 + b1 and packed per-tile BN partials ----
    h, stats = pl.pallas_call(
        _proj1_kernel,
        out_shape=(
            jax.ShapeDtypeStruct((N, P), jnp.bfloat16),
            jax.ShapeDtypeStruct((nt, 2, P), jnp.float32),
        ),
        grid=(nt,),
        in_specs=[
            pl.BlockSpec((tn, D), lambda i: (i, 0)),        # x   (streamed)
            pl.BlockSpec((D, P), lambda i: (0, 0)),         # W1  (resident)
            pl.BlockSpec((1, P), lambda i: (0, 0)),         # b1  (resident)
        ],
        out_specs=(
            pl.BlockSpec((tn, P), lambda i: (i, 0)),        # h
            pl.BlockSpec((1, 2, P), lambda i: (i, 0, 0)),   # packed partial stats
        ),
        compiler_params=cparams(("parallel",)),
    )(xb, params["w1"], params["b1"])

    # ---- Fold BatchNorm batch statistics into a single scale/shift ([1, P], tiny) ----
    stats = jnp.sum(stats, axis=0)                      # (2, P)
    mean = stats[0:1] / N
    var = jnp.maximum(stats[1:2] / N - mean * mean, 0.0)
    scale = params["gamma"] * jax.lax.rsqrt(var + BN_EPS)
    shift = params["beta"] - mean * scale

    h_spec = pl.BlockSpec((tn, P), lambda i: (i, 0))
    vec_p = pl.BlockSpec((1, P), lambda i: (0, 0))
    w2_spec = pl.BlockSpec((P, D), lambda i: (0, 0))
    b2_spec = pl.BlockSpec((1, D), lambda i: (0, 0))

    if wp_resident:
        # ---- Call 2 (fused): no inner K axis, Wp resident, no pl.when bubble ----
        out = pl.pallas_call(
            _proj2_fused_kernel,
            out_shape=jax.ShapeDtypeStruct((N, K_pad), jnp.float32),
            grid=(nt,),
            in_specs=[h_spec, vec_p, vec_p, w2_spec, b2_spec,
                      pl.BlockSpec((D, K_pad), lambda i: (0, 0))],   # Wp (resident)
            out_specs=pl.BlockSpec((tn, K_pad), lambda i: (i, 0)),
            compiler_params=cparams(("parallel",)),
        )(h, scale, shift, params["w2"], params["b2"], wp)
    else:
        # ---- Call 2a: normalized projection y[N, D] (bf16) ----
        y = pl.pallas_call(
            _proj2a_kernel,
            out_shape=jax.ShapeDtypeStruct((N, D), jnp.bfloat16),
            grid=(nt,),
            in_specs=[h_spec, vec_p, vec_p, w2_spec, b2_spec],
            out_specs=pl.BlockSpec((tn, D), lambda i: (i, 0)),
            compiler_params=cparams(("parallel",)),
        )(h, scale, shift, params["w2"], params["b2"])

        # ---- Call 2b: plain tiled y @ Wp matmul (Wp streamed over K) ----
        out = pl.pallas_call(
            _proj2b_kernel,
            out_shape=jax.ShapeDtypeStruct((N, K_pad), jnp.float32),
            grid=(nt, kt),
            in_specs=[
                pl.BlockSpec((tn, D), lambda i, k: (i, 0)),
                pl.BlockSpec((D, tk), lambda i, k: (0, k)),
            ],
            out_specs=pl.BlockSpec((tn, tk), lambda i, k: (i, k)),
            compiler_params=cparams(("parallel", "parallel")),
        )(y, wp)

    return out[:, :K] if K_pad != K else out


def init_params(key, input_dim, projector_dim, nmb_protos):
    """Synthetic params. Linear weights stored pre-transposed ([in, out] = torch W.T)
    in bf16 (MXU operands); biases / BN affine params kept in f32 (VPU math)."""
    k1, k2, k3, k4, k5 = jax.random.split(key, 5)
    s1 = 1.0 / jnp.sqrt(input_dim)
    s2 = 1.0 / jnp.sqrt(projector_dim)
    return {
        "w1": jax.random.uniform(k1, (input_dim, projector_dim), jnp.float32,
                                 -s1, s1).astype(jnp.bfloat16),
        "b1": jax.random.uniform(k2, (1, projector_dim), jnp.float32, -s1, s1),
        "gamma": jnp.ones((1, projector_dim), jnp.float32),
        "beta": jnp.zeros((1, projector_dim), jnp.float32),
        "w2": jax.random.uniform(k3, (projector_dim, input_dim), jnp.float32,
                                 -s2, s2).astype(jnp.bfloat16),
        "b2": jax.random.uniform(k4, (1, input_dim), jnp.float32, -s2, s2),
        "wp": jax.random.uniform(k5, (input_dim, nmb_protos), jnp.float32,
                                 -s1, s1).astype(jnp.bfloat16),
    }


def reference_forward(x, p):
    """Plain-JAX reference mirroring the kernel's bf16/f32 mixed precision."""
    xb = x.astype(jnp.bfloat16)
    h32 = jnp.dot(xb, p["w1"], preferred_element_type=jnp.float32) + p["b1"]
    mean = jnp.mean(h32, axis=0, keepdims=True)
    var = jnp.maximum(jnp.mean(h32 * h32, axis=0, keepdims=True) - mean * mean, 0.0)
    scale = p["gamma"] * jax.lax.rsqrt(var + BN_EPS)
    shift = p["beta"] - mean * scale
    h = h32.astype(jnp.bfloat16).astype(jnp.float32) * scale + shift
    h = jnp.maximum(h, 0.0)
    y = jnp.dot(h.astype(jnp.bfloat16), p["w2"],
                preferred_element_type=jnp.float32) + p["b2"]
    inv = jax.lax.rsqrt(jnp.maximum(jnp.sum(y * y, axis=1, keepdims=True),
                                    NORM_EPS * NORM_EPS))
    y = (y * inv).astype(jnp.bfloat16)
    return jnp.dot(y, p["wp"], preferred_element_type=jnp.float32)


# TODO(synk): get_loss / distributed_sinkhorn are iterative, training-time loss
# utilities (data-dependent normalization loops), not part of forward(); they are
# intentionally not implemented as kernels here.

if __name__ == "__main__":
    # Small but lane-dense shapes: batch=256, hidden_dim=128, projection_dim=256,
    # nmb_protos=512.  Wp is only 128 KiB -> fused resident path; tn=256 (whole batch
    # per grid step), every lane dim a multiple of 128.
    N, D, P, K = 256, 128, 256, 512

    key = jax.random.PRNGKey(0)
    kx, kp = jax.random.split(key)
    x = jax.random.normal(kx, (N, D), jnp.float32)
    params = init_params(kp, D, P, K)

    out = jax.block_until_ready(swav_forward(x, params))
    ref = jax.block_until_ready(reference_forward(x, params))

    assert out.shape == (N, K)
    assert jnp.allclose(out, ref, atol=5e-3, rtol=5e-3), (
        "mismatch vs reference, max abs diff = "
        f"{float(jnp.max(jnp.abs(out - ref)))}")

    print("KERNEL_OK")
</pallas_src>

<mosaic_0001>
module attributes {stable_mosaic.version = 11 : i64} {
  func.func @_proj2_fused_kernel(%arg0: i32, %arg1: memref<256x256xbf16, #tpu.memory_space<vmem>>, %arg2: memref<1x256xf32, #tpu.memory_space<vmem>>, %arg3: memref<1x256xf32, #tpu.memory_space<vmem>>, %arg4: memref<256x128xbf16, #tpu.memory_space<vmem>>, %arg5: memref<1x128xf32, #tpu.memory_space<vmem>>, %arg6: memref<128x512xbf16, #tpu.memory_space<vmem>>, %arg7: memref<256x512xf32, #tpu.memory_space<vmem>>) attributes {dimension_semantics = [#tpu.dimension_semantics<parallel>], iteration_bounds = array<i64: 1>, scalar_prefetch = 0 : i64, scratch_operands = 0 : i64, tpu.core_type = #tpu.core_type<tc>, window_params = [{transform_indices = @transform_0, window_bounds = array<i64: 256, 256>}, {pipeline_mode = #tpu.pipeline_mode<synchronous>, transform_indices = @transform_1, window_bounds = array<i64: 1, 256>}, {pipeline_mode = #tpu.pipeline_mode<synchronous>, transform_indices = @transform_2, window_bounds = array<i64: 1, 256>}, {pipeline_mode = #tpu.pipeline_mode<synchronous>, transform_indices = @transform_3, window_bounds = array<i64: 256, 128>}, {pipeline_mode = #tpu.pipeline_mode<synchronous>, transform_indices = @transform_4, window_bounds = array<i64: 1, 128>}, {pipeline_mode = #tpu.pipeline_mode<synchronous>, transform_indices = @transform_5, window_bounds = array<i64: 128, 512>}, {transform_indices = @transform_6, window_bounds = array<i64: 256, 512>}]} {
    %c0 = arith.constant 0 : index
    %c0_0 = arith.constant 0 : index
    %0 = vector.load %arg1[%c0, %c0_0] : memref<256x256xbf16, #tpu.memory_space<vmem>>, vector<256x256xbf16>
    %c0_1 = arith.constant 0 : index
    %c0_2 = arith.constant 0 : index
    %1 = vector.load %arg2[%c0_1, %c0_2] : memref<1x256xf32, #tpu.memory_space<vmem>>, vector<1x256xf32>
    %c0_3 = arith.constant 0 : index
    %c0_4 = arith.constant 0 : index
    %2 = vector.load %arg3[%c0_3, %c0_4] : memref<1x256xf32, #tpu.memory_space<vmem>>, vector<1x256xf32>
    %c0_5 = arith.constant 0 : index
    %c0_6 = arith.constant 0 : index
    %3 = vector.load %arg4[%c0_5, %c0_6] : memref<256x128xbf16, #tpu.memory_space<vmem>>, vector<256x128xbf16>
    %c0_7 = arith.constant 0 : index
    %c0_8 = arith.constant 0 : index
    %4 = vector.load %arg5[%c0_7, %c0_8] : memref<1x128xf32, #tpu.memory_space<vmem>>, vector<1x128xf32>
    %5 = arith.extf %0 : vector<256x256xbf16> to vector<256x256xf32>
    %6 = vector.broadcast %1 : vector<1x256xf32> to vector<256x256xf32>
    %7 = arith.mulf %5, %6 : vector<256x256xf32>
    %8 = vector.broadcast %2 : vector<1x256xf32> to vector<256x256xf32>
    %9 = arith.addf %7, %8 : vector<256x256xf32>
    %cst = arith.constant 0.000000e+00 : f32
    %10 = vector.broadcast %cst : f32 to vector<256x256xf32>
    %11 = arith.maximumf %9, %10 : vector<256x256xf32>
    %12 = arith.truncf %11 : vector<256x256xf32> to vector<256x256xbf16>
    %cst_9 = arith.constant dense<0.000000e+00> : vector<256x128xf32>
    %13 = tpu.matmul %12, %3, %cst_9 {dimension_numbers = #tpu.dot_dimension_numbers<[1], [0], [0], [1], [0, 0, 1, 1], [], []>} : vector<256x256xbf16>, vector<256x128xbf16>, vector<256x128xf32> -> vector<256x128xf32>
    %14 = vector.broadcast %4 : vector<1x128xf32> to vector<256x128xf32>
    %15 = arith.addf %13, %14 : vector<256x128xf32>
    %16 = arith.mulf %15, %15 : vector<256x128xf32>
    %cst_10 = arith.constant dense<0.000000e+00> : vector<256xf32>
    %17 = vector.multi_reduction <add>, %16, %cst_10 [1] : vector<256x128xf32> to vector<256xf32>
    %18 = vector.shape_cast %17 : vector<256xf32> to vector<256x1xf32>
    %cst_11 = arith.constant 1.000000e-24 : f32
    %19 = vector.broadcast %cst_11 : f32 to vector<256x1xf32>
    %20 = arith.maximumf %18, %19 : vector<256x1xf32>
    %21 = math.rsqrt %20 : vector<256x1xf32>
    %22 = vector.broadcast %21 : vector<256x1xf32> to vector<256x128xf32>
    %23 = arith.mulf %15, %22 : vector<256x128xf32>
    %24 = arith.truncf %23 : vector<256x128xf32> to vector<256x128xbf16>
    %c0_12 = arith.constant 0 : index
    %c0_13 = arith.constant 0 : index
    %25 = vector.load %arg6[%c0_12, %c0_13] : memref<128x512xbf16, #tpu.memory_space<vmem>>, vector<128x512xbf16>
    %cst_14 = arith.constant dense<0.000000e+00> : vector<256x512xf32>
    %26 = tpu.matmul %24, %25, %cst_14 {dimension_numbers = #tpu.dot_dimension_numbers<[1], [0], [0], [1], [0, 0, 1, 1], [], []>} : vector<256x128xbf16>, vector<128x512xbf16>, vector<256x512xf32> -> vector<256x512xf32>
    %c0_15 = arith.constant 0 : index
    %c0_16 = arith.constant 0 : index
    %27 = vector.load %arg7[%c0_15, %c0_16] : memref<256x512xf32, #tpu.memory_space<vmem>>, vector<256x512xf32>
    tpu.vector_store %arg7[%c0_15, %c0_16], %26 {strides = array<i32>} : memref<256x512xf32, #tpu.memory_space<vmem>>, vector<256x512xf32>,
    return
  }
  func.func @transform_0(%arg0: i32) -> (i32, i32) {
    %c0_i32 = arith.constant 0 : i32
    %c0_i32_0 = arith.constant 0 : i32
    return %arg0, %c0_i32 : i32, i32
  }
  func.func @transform_1(%arg0: i32) -> (i32, i32) {
    %c0_i32 = arith.constant 0 : i32
    %c0_i32_0 = arith.constant 0 : i32
    %c0_i32_1 = arith.constant 0 : i32
    return %c0_i32, %c0_i32_0 : i32, i32
  }
  func.func @transform_2(%arg0: i32) -> (i32, i32) {
    %c0_i32 = arith.constant 0 : i32
    %c0_i32_0 = arith.constant 0 : i32
    %c0_i32_1 = arith.constant 0 : i32
    return %c0_i32, %c0_i32_0 : i32, i32
  }
  func.func @transform_3(%arg0: i32) -> (i32, i32) {
    %c0_i32 = arith.constant 0 : i32
    %c0_i32_0 = arith.constant 0 : i32
    %c0_i32_1 = arith.constant 0 : i32
    return %c0_i32, %c0_i32_0 : i32, i32
  }
  func.func @transform_4(%arg0: i32) -> (i32, i32) {
    %c0_i32 = arith.constant 0 : i32
    %c0_i32_0 = arith.constant 0 : i32
    %c0_i32_1 = arith.constant 0 : i32
    return %c0_i32, %c0_i32_0 : i32, i32
  }
  func.func @transform_5(%arg0: i32) -> (i32, i32) {
    %c0_i32 = arith.constant 0 : i32
    %c0_i32_0 = arith.constant 0 : i32
    %c0_i32_1 = arith.constant 0 : i32
    return %c0_i32, %c0_i32_0 : i32, i32
  }
  func.func @transform_6(%arg0: i32) -> (i32, i32) {
    %c0_i32 = arith.constant 0 : i32
    %c0_i32_0 = arith.constant 0 : i32
    return %arg0, %c0_i32 : i32, i32
  }
}

module attributes {stable_mosaic.version = 11 : i64} {
  func.func @_proj1_kernel(%arg0: i32, %arg1: memref<256x128xbf16, #tpu.memory_space<vmem>>, %arg2: memref<128x256xbf16, #tpu.memory_space<vmem>>, %arg3: memref<1x256xf32, #tpu.memory_space<vmem>>, %arg4: memref<256x256xbf16, #tpu.memory_space<vmem>>, %arg5: memref<1x2x256xf32, #tpu.memory_space<vmem>>) attributes {dimension_semantics = [#tpu.dimension_semantics<parallel>], iteration_bounds = array<i64: 1>, scalar_prefetch = 0 : i64, scratch_operands = 0 : i64, tpu.core_type = #tpu.core_type<tc>, window_params = [{transform_indices = @transform_0, window_bounds = array<i64: 256, 128>}, {pipeline_mode = #tpu.pipeline_mode<synchronous>, transform_indices = @transform_1, window_bounds = array<i64: 128, 256>}, {pipeline_mode = #tpu.pipeline_mode<synchronous>, transform_indices = @transform_2, window_bounds = array<i64: 1, 256>}, {transform_indices = @transform_3, window_bounds = array<i64: 256, 256>}, {transform_indices = @transform_4, window_bounds = array<i64: 1, 2, 256>}]} {
    %c0 = arith.constant 0 : index
    %c0_0 = arith.constant 0 : index
    %0 = vector.load %arg1[%c0, %c0_0] : memref<256x128xbf16, #tpu.memory_space<vmem>>, vector<256x128xbf16>
    %c0_1 = arith.constant 0 : index
    %c0_2 = arith.constant 0 : index
    %1 = vector.load %arg2[%c0_1, %c0_2] : memref<128x256xbf16, #tpu.memory_space<vmem>>, vector<128x256xbf16>
    %cst = arith.constant dense<0.000000e+00> : vector<256x256xf32>
    %2 = tpu.matmul %0, %1, %cst {dimension_numbers = #tpu.dot_dimension_numbers<[1], [0], [0], [1], [0, 0, 1, 1], [], []>} : vector<256x128xbf16>, vector<128x256xbf16>, vector<256x256xf32> -> vector<256x256xf32>
    %c0_3 = arith.constant 0 : index
    %c0_4 = arith.constant 0 : index
    %3 = vector.load %arg3[%c0_3, %c0_4] : memref<1x256xf32, #tpu.memory_space<vmem>>, vector<1x256xf32>
    %4 = vector.broadcast %3 : vector<1x256xf32> to vector<256x256xf32>
    %5 = arith.addf %2, %4 : vector<256x256xf32>
    %cst_5 = arith.constant dense<0.000000e+00> : vector<256xf32>
    %6 = vector.multi_reduction <add>, %5, %cst_5 [0] : vector<256x256xf32> to vector<256xf32>
    %7 = vector.shape_cast %6 : vector<256xf32> to vector<1x256xf32>
    %8 = arith.mulf %5, %5 : vector<256x256xf32>
    %cst_6 = arith.constant dense<0.000000e+00> : vector<256xf32>
    %9 = vector.multi_reduction <add>, %8, %cst_6 [0] : vector<256x256xf32> to vector<256xf32>
    %10 = vector.shape_cast %9 : vector<256xf32> to vector<1x256xf32>
    %11 = tpu.concatenate %7, %10 in 0 : vector<1x256xf32>, vector<1x256xf32> -> vector<2x256xf32>
    %12 = vector.shape_cast %11 : vector<2x256xf32> to vector<1x2x256xf32>
    %c0_7 = arith.constant 0 : index
    %c0_8 = arith.constant 0 : index
    %c0_9 = arith.constant 0 : index
    %13 = vector.load %arg5[%c0_7, %c0_8, %c0_9] : memref<1x2x256xf32, #tpu.memory_space<vmem>>, vector<1x2x256xf32>
    tpu.vector_store %arg5[%c0_7, %c0_8, %c0_9], %12 {strides = array<i32>} : memref<1x2x256xf32, #tpu.memory_space<vmem>>, vector<1x2x256xf32>,
    %14 = arith.truncf %5 : vector<256x256xf32> to vector<256x256xbf16>
    %c0_10 = arith.constant 0 : index
    %c0_11 = arith.constant 0 : index
    %15 = vector.load %arg4[%c0_10, %c0_11] : memref<256x256xbf16, #tpu.memory_space<vmem>>, vector<256x256xbf16>
    tpu.vector_store %arg4[%c0_10, %c0_11], %14 {strides = array<i32>} : memref<256x256xbf16, #tpu.memory_space<vmem>>, vector<256x256xbf16>,
    return
  }
  func.func @transform_0(%arg0: i32) -> (i32, i32) {
    %c0_i32 = arith.constant 0 : i32
    %c0_i32_0 = arith.constant 0 : i32
    return %arg0, %c0_i32 : i32, i32
  }
  func.func @transform_1(%arg0: i32) -> (i32, i32) {
    %c0_i32 = arith.constant 0 : i32
    %c0_i32_0 = arith.constant 0 : i32
    %c0_i32_1 = arith.constant 0 : i32
    return %c0_i32, %c0_i32_0 : i32, i32
  }
  func.func @transform_2(%arg0: i32) -> (i32, i32) {
    %c0_i32 = arith.constant 0 : i32
    %c0_i32_0 = arith.constant 0 : i32
    %c0_i32_1 = arith.constant 0 : i32
    return %c0_i32, %c0_i32_0 : i32, i32
  }
  func.func @transform_3(%arg0: i32) -> (i32, i32) {
    %c0_i32 = arith.constant 0 : i32
    %c0_i32_0 = arith.constant 0 : i32
    return %arg0, %c0_i32 : i32, i32
  }
  func.func @transform_4(%arg0: i32) -> (i32, i32, i32) {
    %c0_i32 = arith.constant 0 : i32
    %c0_i32_0 = arith.constant 0 : i32
    %c0_i32_1 = arith.constant 0 : i32
    return %arg0, %c0_i32, %c0_i32_0 : i32, i32, i32
  }
}

</mosaic_0001>

<bundles_post_ra>
// kernel: swav_forward.2
= control target key start
LH: loop header
LB: loop body
LE: loop exit
PB: predicated region body
PF: predicated region fallthrough
CT: control target
= control target key end

     0   :  { %10 = vsyncpa [#allocation3], 0  ;;  %s1095_s15 = smov [#allocation2]   ;;  %s1692_s0 = inlined_call_operand.vmem [shape: bf16[256,128], index: 0, kind: input, shape index: {}]   ;;  %s1693_s1 = inlined_call_operand.vmem [shape: bf16[128,256], index: 1, kind: input, shape index: {}]   ;;  %s1694_s2 = inlined_call_operand.hbm [shape: f32[1,256], index: 2, kind: input, shape index: {}]   ;;  %s1695_s3 = inlined_call_operand.vmem [shape: bf16[256,256], index: 3, kind: output, shape index: {0}]   ;;  %s1696_s4 = inlined_call_operand.vmem [shape: f32[1,2,256], index: 4, kind: output, shape index: {1}]  }
   0x1   :  { %s21_s16 = sshll.u32 %s1095_s15, 4  ;;  %s22_s16 = int_to_ptr.vmem [resolvable:$true] %s21_s16 }
   0x2   :  { %s1081_s17 = scalar_lea.vmem %s22_s16, 32  ;;  %p1086_p1 = scmp.lt.s32.totalorder %s22_s16, %s22_s16 }
   0x3   :  { %p1082_p0 = scmp.ne.s32.totalorder %s22_s16, %s1081_s17  ;;  %p1087_p2 = scmp.lt.s32.totalorder %s1081_s17, %s1081_s17 }
   0x5   :  { %p1088_p3 = por %p1087_p2, %p1086_p1 }
   0x7   :  { %p1089_p4 = pnand %p1088_p3, %p1082_p0 }
   0x9   :  { %1092 = shalt.err (!%p1089_p4)
}
   0xa   :  { %24 = dma.hbm_to_vmem [thread:$0]  %s1694_s2, 32, %s22_s16, [#allocation3]  }
   0xb   :  { %1093 = dma.done.wait [#allocation3], 32  }
   0xc   :  { %1094 = vsyncadd [#allocation3], 4294967264  ;;  %v1096_v0 = vmov 0   ;;  %v1033_v1 = vld [vmem:[%s1693_s1 + $0x74] ss:$8 sps:$4 sm:$0xff]   ;;  %v1057_v17 = vld [vmem:[%s1692_s0] sm:$0xff]   ;;  %v79_v33 = vlaneseq }
   0xd   :  { %297 = vmatprep.mubr.bf16.mxu0 %v1096_v0  ;;  %377 = vmatprep.mubr.bf16.mxu1 %v1096_v0  ;;  %v1035_v2 = vld [vmem:[%s1693_s1 + $0x70] ss:$8 sps:$4 sm:$0xff]   ;;  %v1036_v3 = vld [vmem:[%s1693_s1 + $0x64] ss:$8 sps:$4 sm:$0xff]   ;;  %v1038_v4 = vld [vmem:[%s1693_s1 + $0x60] ss:$8 sps:$4 sm:$0xff]  }
   0xe   :  { %265 = vmatprep.subr.bf16.mxu0 %v1033_v1  ;;  %1015 = vmatprep.subr.bf16.mxu1 %v1033_v1  ;;  %v1039_v5 = vld [vmem:[%s1693_s1 + $0x54] ss:$8 sps:$4 sm:$0xff]   ;;  %v1041_v6 = vld [vmem:[%s1693_s1 + $0x50] ss:$8 sps:$4 sm:$0xff]   ;;  %v1042_v7 = vld [vmem:[%s1693_s1 + $0x44] ss:$8 sps:$4 sm:$0xff]  }
   0xf   :  { %266 = vmatpush1.bf16.msra.mxu0 %v1035_v2  ;;  %1023 = vmatpush1.bf16.msra.mxu1 %v1035_v2  ;;  %v1044_v8 = vld [vmem:[%s1693_s1 + $0x40] ss:$8 sps:$4 sm:$0xff]   ;;  %v1045_v9 = vld [vmem:[%s1693_s1 + $0x34] ss:$8 sps:$4 sm:$0xff]   ;;  %v1047_v10 = vld [vmem:[%s1693_s1 + $0x30] ss:$8 sps:$4 sm:$0xff]  }
  0x10   :  { %267 = vmatprep.subr.bf16.mxu0 %v1036_v3  ;;  %1016 = vmatprep.subr.bf16.mxu1 %v1036_v3  ;;  %v1048_v11 = vld [vmem:[%s1693_s1 + $0x24] ss:$8 sps:$4 sm:$0xff]   ;;  %v1050_v12 = vld [vmem:[%s1693_s1 + $0x20] ss:$8 sps:$4 sm:$0xff]   ;;  %v1051_v13 = vld [vmem:[%s1693_s1 + $0x14] ss:$8 sps:$4 sm:$0xff]  }
  0x11   :  { %v1053_v14 = vld [vmem:[%s1693_s1 + $0x10] ss:$8 sps:$4 sm:$0xff]   ;;  %v1054_v15 = vld [vmem:[%s1693_s1 + $0x4] ss:$8 sps:$4 sm:$0xff]   ;;  %v1056_v16 = vld [vmem:[%s1693_s1] ss:$8 sps:$4 sm:$0xff]  }
  0x12   :  { %v1061_v18 = vld [vmem:[%s1692_s0 + $0x40] sm:$0xff]   ;;  %v1058_v19 = vld [vmem:[%s1692_s0 + $0x8] sm:$0xff]   ;;  %v1059_v21 = vld [vmem:[%s1692_s0 + $0x10] sm:$0xff]   ;;  %v80_v34 = vshrl.u32 %v79_v33, 7  ;;  %vm670_vm0 = vcmask 1040384  }
  0x13   :  { %268 = vmatpush1.bf16.msra.mxu0 %v1038_v4  ;;  %1024 = vmatpush1.bf16.msra.mxu1 %v1038_v4  ;;  %v1063_v20 = vld [vmem:[%s1692_s0 + $0x48] sm:$0xff]   ;;  %v1065_v22 = vld [vmem:[%s1692_s0 + $0x50] sm:$0xff]   ;;  %v1060_v23 = vld [vmem:[%s1692_s0 + $0x18] sm:$0xff]  }
  0x14   :  { %269 = vmatprep.subr.bf16.mxu0 %v1039_v5  ;;  %1017 = vmatprep.subr.bf16.mxu1 %v1039_v5  ;;  %v1067_v24 = vld [vmem:[%s1692_s0 + $0x58] sm:$0xff]   ;;  %v1062_v25 = vld [vmem:[%s1692_s0 + $0x20] sm:$0xff]   ;;  %v1064_v27 = vld [vmem:[%s1692_s0 + $0x28] sm:$0xff]   ;;  %v81_v35 = vsub.s32 0, %v80_v34  ;;  %v85_v36 = vsub.s32 1, %v80_v34 }
  0x15   :  { %v1069_v26 = vld [vmem:[%s1692_s0 + $0x60] sm:$0xff]   ;;  %v1070_v28 = vld [vmem:[%s1692_s0 + $0x68] sm:$0xff]   ;;  %v1066_v29 = vld [vmem:[%s1692_s0 + $0x30] sm:$0xff]  }
  0x16   :  { %v1071_v30 = vld [vmem:[%s1692_s0 + $0x70] sm:$0xff]   ;;  %v1068_v31 = vld [vmem:[%s1692_s0 + $0x38] sm:$0xff]   ;;  %v77_v37 = vld [vmem:[#allocation2] sm:$0x3] }
  0x17   :  { %270 = vmatpush1.bf16.msra.mxu0 %v1041_v6  ;;  %1025 = vmatpush1.bf16.msra.mxu1 %v1041_v6  ;;  %v1072_v32 = vld [vmem:[%s1692_s0 + $0x78] sm:$0xff]   ;;  %v1237_v38 = vrot.slane %v77_v37, %v81_v35  ;;  %v1239_v39 = vrot.slane %v77_v37, %v85_v36 }
  0x18   :  { %271 = vmatprep.subr.bf16.mxu0 %v1042_v7  ;;  %1018 = vmatprep.subr.bf16.mxu1 %v1042_v7 }
  0x1b   :  { %272 = vmatpush1.bf16.msra.mxu0 %v1044_v8  ;;  %1026 = vmatpush1.bf16.msra.mxu1 %v1044_v8 }
  0x1c   :  { %273 = vmatprep.subr.bf16.mxu0 %v1045_v9  ;;  %1019 = vmatprep.subr.bf16.mxu1 %v1045_v9 }
  0x1f   :  { %274 = vmatpush1.bf16.msra.mxu0 %v1047_v10  ;;  %1027 = vmatpush1.bf16.msra.mxu1 %v1047_v10 }
  0x20   :  { %275 = vmatprep.subr.bf16.mxu0 %v1048_v11  ;;  %1020 = vmatprep.subr.bf16.mxu1 %v1048_v11 }
  0x23   :  { %276 = vmatpush1.bf16.msra.mxu0 %v1050_v12  ;;  %1028 = vmatpush1.bf16.msra.mxu1 %v1050_v12 }
  0x24   :  { %277 = vmatprep.subr.bf16.mxu0 %v1051_v13  ;;  %1021 = vmatprep.subr.bf16.mxu1 %v1051_v13 }
  0x27   :  { %278 = vmatpush1.bf16.msra.mxu0 %v1053_v14  ;;  %1029 = vmatpush1.bf16.msra.mxu1 %v1053_v14 }
  0x28   :  { %279 = vmatprep.subr.bf16.mxu0 %v1054_v15  ;;  %1022 = vmatprep.subr.bf16.mxu1 %v1054_v15 }
  0x2b   :  { %280 = vmatpush1.bf16.msra.mxu0 %v1056_v16  ;;  %1030 = vmatpush1.bf16.msra.mxu1 %v1056_v16 }
  0x2e   :  { %298 = vmatmul.mubr.bf16.vlgmr.msra.gmra.mxu0 %v1057_v17  ;;  %378 = vmatmul.mubr.bf16.vlgmr.msra.gmra.mxu1 %v1061_v18 }
  0x2f   :  { %307 = vmatprep.mubr.bf16.mxu0 %v1096_v0  ;;  %387 = vmatprep.mubr.bf16.mxu1 %v1096_v0 }
  0x36   :  { %308 = vmatmul.mubr.bf16.gmra.mxu0 %v1058_v19  ;;  %388 = vmatmul.mubr.bf16.gmra.mxu1 %v1063_v20 }
  0x37   :  { %317 = vmatprep.mubr.bf16.mxu0 %v1096_v0  ;;  %397 = vmatprep.mubr.bf16.mxu1 %v1096_v0 }
  0x3e   :  { %318 = vmatmul.mubr.bf16.gmra.mxu0 %v1059_v21  ;;  %398 = vmatmul.mubr.bf16.gmra.mxu1 %v1065_v22 }
  0x3f   :  { %327 = vmatprep.mubr.bf16.mxu0 %v1096_v0  ;;  %407 = vmatprep.mubr.bf16.mxu1 %v1096_v0 }
  0x46   :  { %328 = vmatmul.mubr.bf16.gmra.mxu0 %v1060_v23  ;;  %408 = vmatmul.mubr.bf16.gmra.mxu1 %v1067_v24 }
  0x47   :  { %337 = vmatprep.mubr.bf16.mxu0 %v1096_v0  ;;  %417 = vmatprep.mubr.bf16.mxu1 %v1096_v0 }
  0x4e   :  { %338 = vmatmul.mubr.bf16.gmra.mxu0 %v1062_v25  ;;  %418 = vmatmul.mubr.bf16.gmra.mxu1 %v1069_v26 }
  0x4f   :  { %347 = vmatprep.mubr.bf16.mxu0 %v1096_v0  ;;  %427 = vmatprep.mubr.bf16.mxu1 %v1096_v0 }
  0x56   :  { %348 = vmatmul.mubr.bf16.gmra.mxu0 %v1064_v27  ;;  %428 = vmatmul.mubr.bf16.gmra.mxu1 %v1070_v28 }
  0x57   :  { %357 = vmatprep.mubr.bf16.mxu0 %v1096_v0  ;;  %437 = vmatprep.mubr.bf16.mxu1 %v1096_v0 }
  0x5e   :  { %358 = vmatmul.mubr.bf16.gmra.mxu0 %v1066_v29  ;;  %438 = vmatmul.mubr.bf16.gmra.mxu1 %v1071_v30 }
  0x5f   :  { %367 = vmatprep.mubr.bf16.mxu0 %v1096_v0  ;;  %447 = vmatprep.mubr.bf16.mxu1 %v1096_v0 }
  0x66   :  { %368 = vmatmul.mubr.bf16.gmra.mxu0 %v1068_v31  ;;  %448 = vmatmul.mubr.bf16.gmra.mxu1 %v1072_v32 }
  0xee   :  { %v299_v40 = vpop.f32.mrf.mxu0  ;;  %v379_v41 = vpop.f32.mrf.mxu1 }
  0xef   :  { %v1242_v43 = vadd.f32 %v379_v41, %v1237_v38  ;;  %v1245_v45 = vadd.f32 %v299_v40, %v1237_v38 }
  0xf0   :  { %v301_v42 = vpop.f32.mrf.mxu0  ;;  %v381_v44 = vpop.f32.mrf.mxu1 }
  0xf1   :  { %v1248_v46 = vadd.f32 %v301_v42, %v1239_v39  ;;  %v1251_v47 = vadd.f32 %v381_v44, %v1239_v39 }
  0xf2   :  { %v303_v48 = vpop.f32.mrf.mxu0  ;;  %v383_v49 = vpop.f32.mrf.mxu1 }
  0xf3   :  { %v983_v50 = vpack.c.bf16 %v1248_v46, %v1245_v45  ;;  %v999_v52 = vpack.c.bf16 %v1251_v47, %v1242_v43  ;;  %v1258_v53 = vadd.f32 %v383_v49, %v1237_v38  ;;  %v1264_v55 = vadd.f32 %v303_v48, %v1237_v38 }
  0xf4   :  { %v305_v51 = vpop.f32.mrf.mxu0  ;;  %v385_v54 = vpop.f32.mrf.mxu1 }
  0xf5   :  { %877 = vst [vmem:[%s1695_s3] sm:$0xff] %v983_v50  ;;  %v1267_v56 = vadd.f32 %v305_v51, %v1239_v39  ;;  %v1270_v57 = vadd.f32 %v385_v54, %v1239_v39  ;;  %893 = vst [vmem:[%s1695_s3 + $0x80] sm:$0xff] %v999_v52  ;;  %v534_v37 = vmul.f32 %v1264_v55, %v1264_v55 }
  0xf6   :  { %v309_v58 = vpop.f32.mrf.mxu0  ;;  %v389_v59 = vpop.f32.mrf.mxu1  ;;  %v532_v52 = vmul.f32 %v1245_v45, %v1245_v45  ;;  %v533_v54 = vmul.f32 %v1248_v46, %v1248_v46 }
  0xf7   :  { %v984_v60 = vpack.c.bf16 %v1267_v56, %v1264_v55  ;;  %v1000_v62 = vpack.c.bf16 %v1270_v57, %v1258_v53  ;;  %v1280_v63 = vadd.f32 %v389_v59, %v1237_v38  ;;  %v1286_v1 = vadd.f32 %v309_v58, %v1237_v38 }
  0xf8   :  { %v311_v61 = vpop.f32.mrf.mxu0  ;;  %v391_v0 = vpop.f32.mrf.mxu1  ;;  %v535_v48 = vmul.f32 %v1267_v56, %v1267_v56 }
  0xf9   :  { %878 = vst [vmem:[%s1695_s3 + $0x8] sm:$0xff] %v984_v60  ;;  %v1289_v2 = vadd.f32 %v311_v61, %v1239_v39  ;;  %v1292_v3 = vadd.f32 %v391_v0, %v1239_v39  ;;  %894 = vst [vmem:[%s1695_s3 + $0x88] sm:$0xff] %v1000_v62  ;;  %v458_v60 = vadd.f32 %v1264_v55, %v1245_v45 }
  0xfa   :  { %v313_v4 = vpop.f32.mrf.mxu0  ;;  %v393_v5 = vpop.f32.mrf.mxu1  ;;  %v536_v61 = vmul.f32 %v1286_v1, %v1286_v1  ;;  %v633_v55 = vadd.f32 %v535_v48, %v533_v54 }
  0xfb   :  { %v985_v6 = vpack.c.bf16 %v1289_v2, %v1286_v1  ;;  %v1001_v8 = vpack.c.bf16 %v1292_v3, %v1280_v63  ;;  %v1302_v9 = vadd.f32 %v393_v5, %v1237_v38  ;;  %v1308_v11 = vadd.f32 %v313_v4, %v1237_v38 }
  0xfc   :  { %v315_v7 = vpop.f32.mrf.mxu0  ;;  %v395_v10 = vpop.f32.mrf.mxu1  ;;  %v537_v62 = vmul.f32 %v1289_v2, %v1289_v2  ;;  %v596_v4 = vadd.f32 %v534_v37, %v532_v52  ;;  %v495_v5 = vadd.f32 %v1267_v56, %v1248_v46 }
  0xfd   :  { %879 = vst [vmem:[%s1695_s3 + $0x10] sm:$0xff] %v985_v6  ;;  %v1311_v12 = vadd.f32 %v315_v7, %v1239_v39  ;;  %895 = vst [vmem:[%s1695_s3 + $0x90] sm:$0xff] %v1001_v8  ;;  %v1317_v14 = vadd.f32 %v395_v10, %v1239_v39  ;;  %v459_v10 = vadd.f32 %v458_v60, %v1286_v1 }
  0xfe   :  { %v319_v13 = vpop.f32.mrf.mxu0  ;;  %v399_v15 = vpop.f32.mrf.mxu1  ;;  %v496_v56 = vadd.f32 %v495_v5, %v1289_v2 }
  0xff   :  { %v986_v16 = vpack.c.bf16 %v1311_v12, %v1308_v11  ;;  %v1002_v18 = vpack.c.bf16 %v1317_v14, %v1302_v9  ;;  %v1324_v19 = vadd.f32 %v399_v15, %v1237_v38  ;;  %v1330_v21 = vadd.f32 %v319_v13, %v1237_v38 }
 0x100   :  { %v321_v17 = vpop.f32.mrf.mxu0  ;;  %v401_v20 = vpop.f32.mrf.mxu1  ;;  %v538_v15 = vmul.f32 %v1308_v11, %v1308_v11 }
 0x101   :  { %880 = vst [vmem:[%s1695_s3 + $0x18] sm:$0xff] %v986_v16  ;;  %v1333_v22 = vadd.f32 %v321_v17, %v1239_v39  ;;  %v1336_v23 = vadd.f32 %v401_v20, %v1239_v39  ;;  %896 = vst [vmem:[%s1695_s3 + $0x98] sm:$0xff] %v1002_v18  ;;  %v539_v16 = vmul.f32 %v1311_v12, %v1311_v12 }
 0x102   :  { %v323_v24 = vpop.f32.mrf.mxu0  ;;  %v403_v25 = vpop.f32.mrf.mxu1  ;;  %v597_v20 = vadd.f32 %v596_v4, %v536_v61 }
 0x103   :  { %v987_v26 = vpack.c.bf16 %v1333_v22, %v1330_v21  ;;  %v1003_v28 = vpack.c.bf16 %v1336_v23, %v1324_v19  ;;  %v1346_v29 = vadd.f32 %v403_v25, %v1237_v38  ;;  %v1352_v31 = vadd.f32 %v323_v24, %v1237_v38 }
 0x104   :  { %v325_v27 = vpop.f32.mrf.mxu0  ;;  %v405_v30 = vpop.f32.mrf.mxu1  ;;  %v634_v24 = vadd.f32 %v633_v55, %v537_v62  ;;  %v460_v25 = vadd.f32 %v459_v10, %v1308_v11 }
 0x105   :  { %881 = vst [vmem:[%s1695_s3 + $0x20] sm:$0xff] %v987_v26  ;;  %v1355_v32 = vadd.f32 %v325_v27, %v1239_v39  ;;  %897 = vst [vmem:[%s1695_s3 + $0xa0] sm:$0xff] %v1003_v28  ;;  %v1361_v34 = vadd.f32 %v405_v30, %v1239_v39  ;;  %v540_v26 = vmul.f32 %v1330_v21, %v1330_v21 }
 0x106   :  { %v329_v33 = vpop.f32.mrf.mxu0  ;;  %v409_v35 = vpop.f32.mrf.mxu1  ;;  %v541_v27 = vmul.f32 %v1333_v22, %v1333_v22  ;;  %v542_v48 = vmul.f32 %v1352_v31, %v1352_v31  ;;  %v461_v54 = vadd.f32 %v460_v25, %v1330_v21 }
 0x107   :  { %v988_v36 = vpack.c.bf16 %v1355_v32, %v1352_v31  ;;  %v1004_v41 = vpack.c.bf16 %v1361_v34, %v1346_v29  ;;  %v1370_v42 = vadd.f32 %v409_v35, %v1237_v38  ;;  %v1378_v49 = vadd.f32 %v329_v33, %v1237_v38 }
 0x108   :  { %v331_v40 = vpop.f32.mrf.mxu0  ;;  %v411_v44 = vpop.f32.mrf.mxu1 }
 0x109   :  { %882 = vst [vmem:[%s1695_s3 + $0x28] sm:$0xff] %v988_v36  ;;  %v1381_v50 = vadd.f32 %v331_v40, %v1239_v39  ;;  %v1384_v51 = vadd.f32 %v411_v44, %v1239_v39  ;;  %898 = vst [vmem:[%s1695_s3 + $0xa8] sm:$0xff] %v1004_v41  ;;  %v497_v36 = vadd.f32 %v496_v56, %v1311_v12 }
 0x10a   :  { %v333_v58 = vpop.f32.mrf.mxu0  ;;  %v413_v59 = vpop.f32.mrf.mxu1  ;;  %v598_v41 = vadd.f32 %v597_v20, %v538_v15  ;;  %v635_v44 = vadd.f32 %v634_v24, %v539_v16  ;;  %v544_v21 = vmul.f32 %v1378_v49, %v1378_v49 }
 0x10b   :  { %v989_v0 = vpack.c.bf16 %v1381_v50, %v1378_v49  ;;  %v1005_v7 = vpack.c.bf16 %v1384_v51, %v1370_v42  ;;  %v1406_v8 = vadd.f32 %v413_v59, %v1237_v38  ;;  %v1413_v13 = vadd.f32 %v333_v58, %v1237_v38 }
 0x10c   :  { %v335_v6 = vpop.f32.mrf.mxu0  ;;  %v415_v45 = vpop.f32.mrf.mxu1  ;;  %v498_v58 = vadd.f32 %v497_v36, %v1333_v22  ;;  %v543_v59 = vmul.f32 %v1355_v32, %v1355_v32  ;;  %v599_v61 = vadd.f32 %v598_v41, %v540_v26  ;;  %v636_v62 = vadd.f32 %v635_v44, %v541_v27 }
 0x10d   :  { %883 = vst [vmem:[%s1695_s3 + $0x30] sm:$0xff] %v989_v0  ;;  %v1416_v46 = vadd.f32 %v335_v6, %v1239_v39  ;;  %899 = vst [vmem:[%s1695_s3 + $0xb0] sm:$0xff] %v1005_v7  ;;  %v1427_v1 = vadd.f32 %v415_v45, %v1239_v39  ;;  %v462_v7 = vadd.f32 %v461_v54, %v1352_v31 }
 0x10e   :  { %v339_v17 = vpop.f32.mrf.mxu0  ;;  %v419_v18 = vpop.f32.mrf.mxu1  ;;  %v600_v55 = vadd.f32 %v599_v61, %v542_v48  ;;  %v499_v10 = vadd.f32 %v498_v58, %v1355_v32  ;;  %v545_v56 = vmul.f32 %v1381_v50, %v1381_v50  ;;  %v546_v20 = vmul.f32 %v1413_v13, %v1413_v13 }
 0x10f   :  { %v990_v2 = vpack.c.bf16 %v1416_v46, %v1413_v13  ;;  %v1006_v30 = vpack.c.bf16 %v1427_v1, %v1406_v8  ;;  %v1439_v33 = vadd.f32 %v419_v18, %v1237_v38  ;;  %v340_v11 = vadd.f32 %v339_v17, %v1237_v38 }
 0x110   :  { %v341_v28 = vpop.f32.mrf.mxu0  ;;  %v421_v35 = vpop.f32.mrf.mxu1  ;;  %v637_v17 = vadd.f32 %v636_v62, %v543_v59  ;;  %v463_v18 = vadd.f32 %v462_v7, %v1378_v49  ;;  %v500_v32 = vadd.f32 %v499_v10, %v1381_v50  ;;  %v547_v25 = vmul.f32 %v1416_v46, %v1416_v46 }
 0x111   :  { %884 = vst [vmem:[%s1695_s3 + $0x38] sm:$0xff] %v990_v2  ;;  %v342_v37 = vadd.f32 %v341_v28, %v1239_v39  ;;  %v1448_v40 = vadd.f32 %v421_v35, %v1239_v39  ;;  %900 = vst [vmem:[%s1695_s3 + $0xb8] sm:$0xff] %v1006_v30  ;;  %v601_v30 = vadd.f32 %v600_v55, %v544_v21 }
 0x112   :  { %v343_v52 = vpop.f32.mrf.mxu0  ;;  %v423_v12 = vpop.f32.mrf.mxu1  ;;  %v638_v36 = vadd.f32 %v637_v17, %v545_v56  ;;  %v464_v41 = vadd.f32 %v463_v18, %v1413_v13  ;;  %v548_v44 = vmul.f32 %v340_v11, %v340_v11  ;;  %v501_v58 = vadd.f32 %v500_v32, %v1416_v46 }
 0x113   :  { %v991_v60 = vpack.c.bf16 %v342_v37, %v340_v11  ;;  %v1007_v4 = vpack.c.bf16 %v1448_v40, %v1439_v33  ;;  %v1462_v5 = vadd.f32 %v423_v12, %v1237_v38  ;;  %v344_v22 = vadd.f32 %v343_v52, %v1237_v38 }
 0x114   :  { %v345_v0 = vpop.f32.mrf.mxu0  ;;  %v425_v6 = vpop.f32.mrf.mxu1  ;;  %v549_v48 = vmul.f32 %v342_v37, %v342_v37  ;;  %v602_v54 = vadd.f32 %v601_v30, %v546_v20  ;;  %v465_v61 = vadd.f32 %v464_v41, %v340_v11 }
 0x115   :  { %885 = vst [vmem:[%s1695_s3 + $0x40] sm:$0xff] %v991_v60  ;;  %v346_v45 = vadd.f32 %v345_v0, %v1239_v39  ;;  %901 = vst [vmem:[%s1695_s3 + $0xc0] sm:$0xff] %v1007_v4  ;;  %v1479_v31 = vadd.f32 %v425_v6, %v1239_v39  ;;  %v639_v60 = vadd.f32 %v638_v36, %v547_v25 }
 0x116   :  { %v349_v15 = vpop.f32.mrf.mxu0  ;;  %v429_v16 = vpop.f32.mrf.mxu1  ;;  %v502_v6 = vadd.f32 %v501_v58, %v342_v37  ;;  %v550_v7 = vmul.f32 %v344_v22, %v344_v22  ;;  %v603_v55 = vadd.f32 %v602_v54, %v548_v44 }
 0x117   :  { %v992_v24 = vpack.c.bf16 %v346_v45, %v344_v22  ;;  %v1008_v26 = vpack.c.bf16 %v1479_v31, %v1462_v5  ;;  %v1490_v27 = vadd.f32 %v429_v16, %v1237_v38  ;;  %v350_v49 = vadd.f32 %v349_v15, %v1237_v38 }
 0x118   :  { %v351_v2 = vpop.f32.mrf.mxu0  ;;  %v431_v28 = vpop.f32.mrf.mxu1  ;;  %v640_v11 = vadd.f32 %v639_v60, %v549_v48  ;;  %v551_v10 = vmul.f32 %v346_v45, %v346_v45  ;;  %v466_v16 = vadd.f32 %v465_v61, %v344_v22  ;;  %v503_v17 = vadd.f32 %v502_v6, %v346_v45 }
 0x119   :  { %886 = vst [vmem:[%s1695_s3 + $0x48] sm:$0xff] %v992_v24  ;;  %v352_v50 = vadd.f32 %v351_v2, %v1239_v39  ;;  %v1498_v35 = vadd.f32 %v431_v28, %v1239_v39  ;;  %902 = vst [vmem:[%s1695_s3 + $0xc8] sm:$0xff] %v1008_v26  ;;  %v552_v18 = vmul.f32 %v350_v49, %v350_v49 }
 0x11a   :  { %v353_v52 = vpop.f32.mrf.mxu0  ;;  %v433_v12 = vpop.f32.mrf.mxu1  ;;  %v604_v30 = vadd.f32 %v603_v55, %v550_v7  ;;  %v641_v41 = vadd.f32 %v640_v11, %v551_v10  ;;  %v467_v44 = vadd.f32 %v466_v16, %v350_v49 }
 0x11b   :  { %v993_v59 = vpack.c.bf16 %v352_v50, %v350_v49  ;;  %v1009_v0 = vpack.c.bf16 %v1498_v35, %v1490_v27  ;;  %v1508_v13 = vadd.f32 %v433_v12, %v1237_v38  ;;  %v354_v21 = vadd.f32 %v353_v52, %v1237_v38 }
 0x11c   :  { %v355_v62 = vpop.f32.mrf.mxu0  ;;  %v435_v4 = vpop.f32.mrf.mxu1  ;;  %v553_v24 = vmul.f32 %v352_v50, %v352_v50  ;;  %v504_v48 = vadd.f32 %v503_v17, %v352_v50  ;;  %v605_v58 = vadd.f32 %v604_v30, %v552_v18 }
 0x11d   :  { %887 = vst [vmem:[%s1695_s3 + $0x50] sm:$0xff] %v993_v59  ;;  %v356_v46 = vadd.f32 %v355_v62, %v1239_v39  ;;  %903 = vst [vmem:[%s1695_s3 + $0xd0] sm:$0xff] %v1009_v0  ;;  %v1519_v15 = vadd.f32 %v435_v4, %v1239_v39  ;;  %v554_v36 = vmul.f32 %v354_v21, %v354_v21 }
 0x11e   :  { %v359_v56 = vpop.f32.mrf.mxu0  ;;  %v439_v37 = vpop.f32.mrf.mxu1  ;;  %v642_v62 = vadd.f32 %v641_v41, %v553_v24  ;;  %v468_v6 = vadd.f32 %v467_v44, %v354_v21 }
 0x11f   :  { %v994_v20 = vpack.c.bf16 %v356_v46, %v354_v21  ;;  %v360_v32 = vadd.f32 %v359_v56, %v1237_v38  ;;  %v1010_v2 = vpack.c.bf16 %v1519_v15, %v1508_v13  ;;  %v1525_v26 = vadd.f32 %v439_v37, %v1237_v38 }
 0x120   :  { %v361_v25 = vpop.f32.mrf.mxu0  ;;  %v441_v28 = vpop.f32.mrf.mxu1  ;;  %v555_v52 = vmul.f32 %v356_v46, %v356_v46  ;;  %v606_v7 = vadd.f32 %v605_v58, %v554_v36  ;;  %v505_v55 = vadd.f32 %v504_v48, %v356_v46 }
 0x121   :  { %888 = vst [vmem:[%s1695_s3 + $0x58] sm:$0xff] %v994_v20  ;;  %v362_v22 = vadd.f32 %v361_v25, %v1239_v39  ;;  %v1532_v45 = vadd.f32 %v441_v28, %v1239_v39  ;;  %904 = vst [vmem:[%s1695_s3 + $0xd8] sm:$0xff] %v1010_v2  ;;  %v556_v59 = vmul.f32 %v360_v32, %v360_v32 }
 0x122   :  { %v363_v12 = vpop.f32.mrf.mxu0  ;;  %v443_v54 = vpop.f32.mrf.mxu1  ;;  %v643_v10 = vadd.f32 %v642_v62, %v555_v52  ;;  %v469_v18 = vadd.f32 %v468_v6, %v360_v32 }
 0x123   :  { %v995_v60 = vpack.c.bf16 %v362_v22, %v360_v32  ;;  %v364_v61 = vadd.f32 %v363_v12, %v1237_v38  ;;  %v1011_v4 = vpack.c.bf16 %v1532_v45, %v1525_v26  ;;  %v1541_v49 = vadd.f32 %v443_v54, %v1237_v38 }
 0x124   :  { %v365_v0 = vpop.f32.mrf.mxu0  ;;  %v445_v50 = vpop.f32.mrf.mxu1  ;;  %v557_v56 = vmul.f32 %v362_v22, %v362_v22  ;;  %v607_v46 = vadd.f32 %v606_v7, %v556_v59  ;;  %v506_v20 = vadd.f32 %v505_v55, %v362_v22 }
 0x125   :  { %889 = vst [vmem:[%s1695_s3 + $0x60] sm:$0xff] %v995_v60  ;;  %v366_v11 = vadd.f32 %v365_v0, %v1239_v39  ;;  %v558_v37 = vmul.f32 %v364_v61, %v364_v61  ;;  %905 = vst [vmem:[%s1695_s3 + $0xe0] sm:$0xff] %v1011_v4  ;;  %v1551_v17 = vadd.f32 %v445_v50, %v1239_v39 }
 0x126   :  { %v369_v16 = vpop.f32.mrf.mxu0  ;;  %v449_v21 = vpop.f32.mrf.mxu1  ;;  %v470_v44 = vadd.f32 %v469_v18, %v364_v61  ;;  %v644_v48 = vadd.f32 %v643_v10, %v557_v56 }
 0x127   :  { %v996_v24 = vpack.c.bf16 %v366_v11, %v364_v61  ;;  %v559_v25 = vmul.f32 %v366_v11, %v366_v11  ;;  %v370_v2 = vadd.f32 %v369_v16, %v1237_v38  ;;  %v1012_v30 = vpack.c.bf16 %v1551_v17, %v1541_v49 }
 0x128   :  { %v371_v28 = vpop.f32.mrf.mxu0  ;;  %v1557_v36 = vadd.f32 %v449_v21, %v1237_v38  ;;  %v451_v41 = vpop.f32.mrf.mxu1  ;;  %v608_v52 = vadd.f32 %v607_v46, %v558_v37  ;;  %v507_v12 = vadd.f32 %v506_v20, %v366_v11  ;;  %v564_v21 = vmul.f32 %v1242_v43, %v1242_v43 }
 0x129   :  { %890 = vst [vmem:[%s1695_s3 + $0x68] sm:$0xff] %v996_v24  ;;  %v372_v32 = vadd.f32 %v371_v28, %v1239_v39  ;;  %v1564_v22 = vadd.f32 %v451_v41, %v1239_v39  ;;  %v560_v54 = vmul.f32 %v370_v2, %v370_v2  ;;  %906 = vst [vmem:[%s1695_s3 + $0xe8] sm:$0xff] %v1012_v30 }
 0x12a   :  { %v373_v58 = vpop.f32.mrf.mxu0  ;;  %v453_v59 = vpop.f32.mrf.mxu1  ;;  %v471_v60 = vadd.f32 %v470_v44, %v370_v2  ;;  %v645_v4 = vadd.f32 %v644_v48, %v559_v25  ;;  %v566_v28 = vmul.f32 %v1258_v53, %v1258_v53 }
 0x12b   :  { %v561_v61 = vmul.f32 %v372_v32, %v372_v32  ;;  %v997_v62 = vpack.c.bf16 %v372_v32, %v370_v2  ;;  %v374_v0 = vadd.f32 %v373_v58, %v1237_v38  ;;  %v508_v50 = vadd.f32 %v507_v12, %v372_v32 }
 0x12c   :  { %v375_v6 = vpop.f32.mrf.mxu0  ;;  %v1013_v7 = vpack.c.bf16 %v1564_v22, %v1557_v36  ;;  %v1573_v55 = vadd.f32 %v453_v59, %v1237_v38  ;;  %v455_v11 = vpop.f32.mrf.mxu1  ;;  %v609_v10 = vadd.f32 %v608_v52, %v560_v54  ;;  %v565_v2 = vmul.f32 %v1251_v47, %v1251_v47 }
 0x12d   :  { %891 = vst [vmem:[%s1695_s3 + $0x70] sm:$0xff] %v997_v62  ;;  %v472_v56 = vadd.f32 %v471_v60, %v374_v0  ;;  %v562_v37 = vmul.f32 %v374_v0, %v374_v0  ;;  %v376_v16 = vadd.f32 %v375_v6, %v1239_v39  ;;  %v646_v18 = vadd.f32 %v645_v4, %v561_v61 }
 0x12e   :  { %907 = vst [vmem:[%s1695_s3 + $0xf0] sm:$0xff] %v1013_v7  ;;  %v1585_v38 = vadd.f32 %v455_v11, %v1239_v39  ;;  %v568_v52 = vmul.f32 %v1280_v63, %v1280_v63  ;;  %v569_v58 = vmul.f32 %v1292_v3, %v1292_v3  ;;  %v570_v59 = vmul.f32 %v1302_v9, %v1302_v9 }
 0x12f   :  { %v473_v46 = vadd.f32 %v472_v56, %v1242_v43  ;;  %v610_v20 = vadd.f32 %v609_v10, %v562_v37  ;;  %v509_v24 = vadd.f32 %v508_v50, %v376_v16  ;;  %v563_v25 = vmul.f32 %v376_v16, %v376_v16 }
 0x130   :  { %v998_v30 = vpack.c.bf16 %v376_v16, %v374_v0  ;;  %v1014_v41 = vpack.c.bf16 %v1585_v38, %v1573_v55  ;;  %v567_v43 = vmul.f32 %v1270_v57, %v1270_v57  ;;  %v571_v4 = vmul.f32 %v1317_v14, %v1317_v14 }
 0x131   :  { %v474_v44 = vadd.f32 %v473_v46, %v1258_v53  ;;  %v611_v32 = vadd.f32 %v610_v20, %v564_v21  ;;  %v510_v39 = vadd.f32 %v509_v24, %v1251_v47  ;;  %v647_v48 = vadd.f32 %v646_v18, %v563_v25 }
 0x132   :  { %892 = vst [vmem:[%s1695_s3 + $0x78] sm:$0xff] %v998_v30  ;;  %908 = vst [vmem:[%s1695_s3 + $0xf8] sm:$0xff] %v1014_v41  ;;  %v573_v11 = vmul.f32 %v1336_v23, %v1336_v23  ;;  %v575_v16 = vmul.f32 %v1361_v34, %v1361_v34  ;;  %v577_v20 = vmul.f32 %v1384_v51, %v1384_v51 }
 0x133   :  { %v475_v53 = vadd.f32 %v474_v44, %v1280_v63  ;;  %v612_v12 = vadd.f32 %v611_v32, %v566_v28  ;;  %v511_v47 = vadd.f32 %v510_v39, %v1270_v57  ;;  %v648_v54 = vadd.f32 %v647_v48, %v565_v2 }
 0x134   :  { %v572_v63 = vmul.f32 %v1324_v19, %v1324_v19  ;;  %v579_v28 = vmul.f32 %v1427_v1, %v1427_v1  ;;  %v581_v32 = vmul.f32 %v1448_v40, %v1448_v40 }
 0x135   :  { %v476_v60 = vadd.f32 %v475_v53, %v1302_v9  ;;  %v613_v61 = vadd.f32 %v612_v12, %v568_v52  ;;  %v512_v62 = vadd.f32 %v511_v47, %v1292_v3  ;;  %v649_v0 = vadd.f32 %v648_v54, %v567_v43 }
 0x136   :  { %v574_v9 = vmul.f32 %v1346_v29, %v1346_v29  ;;  %v583_v52 = vmul.f32 %v1479_v31, %v1479_v31  ;;  %v585_v54 = vmul.f32 %v1498_v35, %v1498_v35 }
 0x137   :  { %v614_v57 = vadd.f32 %v613_v61, %v570_v59  ;;  %v513_v50 = vadd.f32 %v512_v62, %v1317_v14  ;;  %v650_v6 = vadd.f32 %v649_v0, %v569_v58  ;;  %v477_v7 = vadd.f32 %v476_v60, %v1324_v19 }
 0x138   :  { %v576_v14 = vmul.f32 %v1370_v42, %v1370_v42  ;;  %v587_v61 = vmul.f32 %v1519_v15, %v1519_v15 }
 0x139   :  { %v651_v3 = vadd.f32 %v650_v6, %v571_v4  ;;  %v478_v10 = vadd.f32 %v477_v7, %v1346_v29  ;;  %v615_v56 = vadd.f32 %v614_v57, %v572_v63  ;;  %v514_v37 = vadd.f32 %v513_v50, %v1336_v23 }
 0x13a   :  { %v578_v29 = vmul.f32 %v1406_v8, %v1406_v8  ;;  %v589_v63 = vmul.f32 %v1532_v45, %v1532_v45  ;;  %v591_v7 = vmul.f32 %v1551_v17, %v1551_v17 }
 0x13b   :  { %v479_v19 = vadd.f32 %v478_v10, %v1370_v42  ;;  %v616_v21 = vadd.f32 %v615_v56, %v574_v9  ;;  %v515_v18 = vadd.f32 %v514_v37, %v1361_v34  ;;  %v652_v46 = vadd.f32 %v651_v3, %v573_v11 }
 0x13c   :  { %v580_v42 = vmul.f32 %v1439_v33, %v1439_v33  ;;  %v593_v10 = vmul.f32 %v1564_v22, %v1564_v22 }
 0x13d   :  { %v480_v23 = vadd.f32 %v479_v19, %v1406_v8  ;;  %v617_v24 = vadd.f32 %v616_v21, %v576_v14  ;;  %v516_v25 = vadd.f32 %v515_v18, %v1384_v51  ;;  %v653_v2 = vadd.f32 %v652_v46, %v575_v16 }
 0x13e   :  { %v582_v8 = vmul.f32 %v1462_v5, %v1462_v5  ;;  %v595_v14 = vmul.f32 %v1585_v38, %v1585_v38 }
 0x13f   :  { %v481_v34 = vadd.f32 %v480_v23, %v1439_v33  ;;  %v618_v30 = vadd.f32 %v617_v24, %v578_v29  ;;  %v517_v41 = vadd.f32 %v516_v25, %v1427_v1  ;;  %v654_v44 = vadd.f32 %v653_v2, %v577_v20 }
 0x140   :  { %v584_v33 = vmul.f32 %v1490_v27, %v1490_v27 }
 0x141   :  { %v482_v51 = vadd.f32 %v481_v34, %v1462_v5  ;;  %v619_v39 = vadd.f32 %v618_v30, %v580_v42  ;;  %v518_v48 = vadd.f32 %v517_v41, %v1448_v40  ;;  %v655_v43 = vadd.f32 %v654_v44, %v579_v28 }
 0x142   :  { %v586_v5 = vmul.f32 %v1508_v13, %v1508_v13 }
 0x143   :  { %v620_v1 = vadd.f32 %v619_v39, %v582_v8  ;;  %v519_v53 = vadd.f32 %v518_v48, %v1479_v31  ;;  %v656_v12 = vadd.f32 %v655_v43, %v581_v32  ;;  %v483_v47 = vadd.f32 %v482_v51, %v1490_v27 }
 0x144   :  { %v588_v31 = vmul.f32 %v1525_v26, %v1525_v26 }
 0x145   :  { %v657_v40 = vadd.f32 %v656_v12, %v583_v52  ;;  %v621_v58 = vadd.f32 %v620_v1, %v584_v33  ;;  %v520_v59 = vadd.f32 %v519_v53, %v1498_v35  ;;  %v484_v60 = vadd.f32 %v483_v47, %v1508_v13 }
 0x146   :  { %v590_v35 = vmul.f32 %v1541_v49, %v1541_v49 }
 0x147   :  { %v658_v62 = vadd.f32 %v657_v40, %v585_v54  ;;  %v622_v27 = vadd.f32 %v621_v58, %v586_v5  ;;  %v521_v0 = vadd.f32 %v520_v59, %v1519_v15  ;;  %v485_v4 = vadd.f32 %v484_v60, %v1525_v26 }
 0x148   :  { %v592_v15 = vmul.f32 %v1557_v36, %v1557_v36 }
 0x149   :  { %v659_v57 = vadd.f32 %v658_v62, %v587_v61  ;;  %v623_v13 = vadd.f32 %v622_v27, %v588_v31  ;;  %v522_v50 = vadd.f32 %v521_v0, %v1532_v45  ;;  %v486_v6 = vadd.f32 %v485_v4, %v1541_v49 }
 0x14a   :  { %v594_v45 = vmul.f32 %v1573_v55, %v1573_v55 }
 0x14b   :  { %v660_v11 = vadd.f32 %v659_v57, %v589_v63  ;;  %v624_v26 = vadd.f32 %v623_v13, %v590_v35  ;;  %v523_v9 = vadd.f32 %v522_v50, %v1551_v17  ;;  %v487_v3 = vadd.f32 %v486_v6, %v1557_v36 }
 0x14d   :  { %v661_v56 = vadd.f32 %v660_v11, %v591_v7  ;;  %v625_v49 = vadd.f32 %v624_v26, %v592_v15  ;;  %v524_v37 = vadd.f32 %v523_v9, %v1564_v22  ;;  %v488_v16 = vadd.f32 %v487_v3, %v1573_v55 }
 0x14f   :  { %v662_v19 = vadd.f32 %v661_v56, %v593_v10  ;;  %v489_v21 = vrot.slane %v488_v16, 4  ;;  %v626_v17 = vadd.f32 %v625_v49, %v594_v45  ;;  %v525_v36 = vadd.f32 %v524_v37, %v1585_v38 }
 0x151   :  { %v490_v18 = vadd.f32 %v489_v21, %v488_v16  ;;  %v627_v46 = vrot.slane %v626_v17, 4  ;;  %v526_v20 = vrot.slane %v525_v36, 4  ;;  %v663_v29 = vadd.f32 %v662_v19, %v595_v14 }
 0x153   :  { %v491_v23 = vrot.slane %v490_v18, 2  ;;  %v628_v24 = vadd.f32 %v627_v46, %v626_v17  ;;  %v527_v25 = vadd.f32 %v526_v20, %v525_v36  ;;  %v664_v2 = vrot.slane %v663_v29, 4 }
 0x155   :  { %v492_v28 = vadd.f32 %v491_v23, %v490_v18  ;;  %v629_v22 = vrot.slane %v628_v24, 2  ;;  %v528_v42 = vrot.slane %v527_v25, 2  ;;  %v665_v55 = vadd.f32 %v664_v2, %v663_v29 }
 0x157   :  { %v630_v34 = vadd.f32 %v629_v22, %v628_v24  ;;  %v529_v30 = vadd.f32 %v528_v42, %v527_v25  ;;  %v666_v41 = vrot.slane %v665_v55, 2  ;;  %v493_v44 = vrot.slane %v492_v28, 1 }
 0x159   :  { %v631_v32 = vrot.slane %v630_v34, 1  ;;  %v530_v8 = vrot.slane %v529_v30, 1  ;;  %v667_v51 = vadd.f32 %v666_v41, %v665_v55  ;;  %v494_v48 = vadd.f32 %v493_v44, %v492_v28 }
 0x15b   :  { %v632_v38 = vadd.f32 %v631_v32, %v630_v34  ;;  %v668_v39 = vrot.slane %v667_v51, 1  ;;  %v531_v43 = vadd.f32 %v530_v8, %v529_v30 }
 0x15d   :  { %v669_v52 = vadd.f32 %v668_v39, %v667_v51  ;;  %v671_v33 = vsel %vm670_vm0, %v494_v48, %v632_v38 }
 0x15f   :  { %v672_v1 = vsel %vm670_vm0, %v531_v43, %v669_v52 }
 0x160   :  { %v675_v53 = vcombine.low %v671_v33, %v672_v1 }
 0x162   :  { %950 = vst.sshfl [vmem:[%s1696_s4] sm:$0x33 pattern:$0x76325410] %v675_v53 }
 0x163   :  { %917 = vsyncpa [#allocation3], 1 }

// kernel: swav_forward.3
= control target key start
LH: loop header
LB: loop body
LE: loop exit
PB: predicated region body
PF: predicated region fallthrough
CT: control target
= control target key end

     0   :  { %v157_v5 = vlaneseq  ;;  %s2636_s0 = inlined_call_operand.vmem [shape: bf16[256,256], index: 0, kind: input, shape index: {}]   ;;  %s2637_s1 = inlined_call_operand.vmem [shape: f32[1,256], index: 1, kind: input, shape index: {}]   ;;  %s2638_s2 = inlined_call_operand.vmem [shape: f32[1,256], index: 2, kind: input, shape index: {}]   ;;  %s2639_s3 = inlined_call_operand.vmem [shape: bf16[256,128], index: 3, kind: input, shape index: {}]   ;;  %s2640_s4 = inlined_call_operand.vmem [shape: f32[1,128], index: 4, kind: input, shape index: {}]   ;;  %s2641_s5 = inlined_call_operand.vmem [shape: bf16[128,512], index: 5, kind: input, shape index: {}]   ;;  %s2642_s6 = inlined_call_operand.hbm [shape: f32[256,512], index: 6, kind: output, shape index: {}]  }
   0x1   :  { %v1776_v0 = vld [vmem:[%s2639_s3 + $0x78] sm:$0xff]   ;;  %v1778_v2 = vld [vmem:[%s2639_s3 + $0x70] sm:$0xff]   ;;  %v1780_v4 = vld [vmem:[%s2639_s3 + $0x68] sm:$0xff]  }
   0x2   :  { %v1777_v1 = vld [vmem:[%s2639_s3 + $0x38] sm:$0xff]   ;;  %1644 = vmatprep.subr.bf16.mxu0 %v1776_v0  ;;  %1756 = vmatprep.subr.bf16.mxu1 %v1776_v0  ;;  %v1779_v3 = vld [vmem:[%s2639_s3 + $0x30] sm:$0xff]   ;;  %v1781_v6 = vld [vmem:[%s2639_s3 + $0x28] sm:$0xff]   ;;  %v158_v8 = vshrl.u32 %v157_v5, 7 }
   0x3   :  { %1645 = vmatpush3.bf16.msra.mxu0 %v1777_v1  ;;  %1764 = vmatpush3.bf16.msra.mxu1 %v1777_v1  ;;  %v1782_v7 = vld [vmem:[%s2639_s3 + $0x60] sm:$0xff]   ;;  %v1784_v10 = vld [vmem:[%s2639_s3 + $0x58] sm:$0xff]   ;;  %v1786_v14 = vld [vmem:[%s2639_s3 + $0x50] sm:$0xff]  }
   0x4   :  { %1646 = vmatprep.subr.bf16.mxu0 %v1778_v2  ;;  %1757 = vmatprep.subr.bf16.mxu1 %v1778_v2  ;;  %v1783_v9 = vld [vmem:[%s2639_s3 + $0x20] sm:$0xff]   ;;  %v159_v11 = vsub.s32 0, %v158_v8  ;;  %v1785_v12 = vld [vmem:[%s2639_s3 + $0x18] sm:$0xff]   ;;  %v163_v13 = vsub.s32 1, %v158_v8  ;;  %v26_v16 = vld [vmem:[%s2636_s0 + $0x8] sm:$0xff] }
   0x5   :  { %v25_v15 = vld [vmem:[%s2636_s0] sm:$0xff]  ;;  %v94_v21 = vunpack.c.l.bf16 %v26_v16  ;;  %v95_v22 = vunpack.c.h.bf16 %v26_v16  ;;  %v27_v23 = vld [vmem:[%s2636_s0 + $0x10] sm:$0xff]  ;;  %v28_v24 = vld [vmem:[%s2636_s0 + $0x18] sm:$0xff] }
   0x6   :  { %v57_v17 = vld [vmem:[%s2637_s1] sm:$0x3]  ;;  %v92_v19 = vunpack.c.l.bf16 %v25_v15  ;;  %v93_v20 = vunpack.c.h.bf16 %v25_v15  ;;  %v1787_v29 = vld [vmem:[%s2639_s3 + $0x10] sm:$0xff]   ;;  %v97_v30 = vunpack.c.h.bf16 %v27_v23  ;;  %v99_v31 = vunpack.c.h.bf16 %v28_v24  ;;  %v1788_v34 = vld [vmem:[%s2639_s3 + $0x48] sm:$0xff]  }
   0x7   :  { %1647 = vmatpush3.bf16.msra.mxu0 %v1779_v3  ;;  %1765 = vmatpush3.bf16.msra.mxu1 %v1779_v3  ;;  %v58_v18 = vld [vmem:[%s2638_s2] sm:$0x3]  ;;  %v2016_v25 = vrot.slane %v57_v17, %v159_v11  ;;  %v2018_v26 = vrot.slane %v57_v17, %v163_v13  ;;  %v96_v32 = vunpack.c.l.bf16 %v27_v23  ;;  %v98_v33 = vunpack.c.l.bf16 %v28_v24  ;;  %v1789_v47 = vld [vmem:[%s2639_s3 + $0x8] sm:$0xff]   ;;  %v31_v62 = vld [vmem:[%s2636_s0 + $0x30] sm:$0xff] }
   0x8   :  { %1648 = vmatprep.subr.bf16.mxu0 %v1780_v4  ;;  %1758 = vmatprep.subr.bf16.mxu1 %v1780_v4  ;;  %v2020_v27 = vrot.slane %v58_v18, %v159_v11  ;;  %v2022_v28 = vrot.slane %v58_v18, %v163_v13  ;;  %v29_v52 = vld [vmem:[%s2636_s0 + $0x20] sm:$0xff]  ;;  %v30_v53 = vld [vmem:[%s2636_s0 + $0x28] sm:$0xff]  ;;  %v32_v63 = vld [vmem:[%s2636_s0 + $0x38] sm:$0xff]  ;;  %v105_v11 = vunpack.c.h.bf16 %v31_v62  ;;  %v104_v15 = vunpack.c.l.bf16 %v31_v62 }
   0x9   :  { %v168_v35 = vmul.f32 %v2018_v26, %v93_v20  ;;  %v170_v36 = vmul.f32 %v2018_v26, %v95_v22  ;;  %v167_v37 = vmul.f32 %v2016_v25, %v92_v19  ;;  %v169_v38 = vmul.f32 %v2016_v25, %v94_v21  ;;  %v1790_v54 = vld [vmem:[%s2639_s3 + $0x40] sm:$0xff]   ;;  %v34_v22 = vld [vmem:[%s2636_s0 + $0x48] sm:$0xff] }
   0xa   :  { %v172_v39 = vmul.f32 %v2018_v26, %v97_v30  ;;  %v174_v40 = vmul.f32 %v2018_v26, %v99_v31  ;;  %v171_v41 = vmul.f32 %v2016_v25, %v96_v32  ;;  %v173_v42 = vmul.f32 %v2016_v25, %v98_v33  ;;  %v1791_v4 = vld [vmem:[%s2639_s3] sm:$0xff]  }
   0xb   :  { %1649 = vmatpush3.bf16.msra.mxu0 %v1781_v6  ;;  %1766 = vmatpush3.bf16.msra.mxu1 %v1781_v6  ;;  %v243_v43 = vadd.f32 %v2022_v28, %v168_v35  ;;  %v245_v44 = vadd.f32 %v2022_v28, %v170_v36  ;;  %v242_v45 = vadd.f32 %v2020_v27, %v167_v37  ;;  %v101_v2 = vunpack.c.h.bf16 %v29_v52  ;;  %v33_v17 = vld [vmem:[%s2636_s0 + $0x40] sm:$0xff]  ;;  %v42_v36 = vld [vmem:[%s2636_s0 + $0x88] sm:$0xff] }
   0xc   :  { %1650 = vmatprep.subr.bf16.mxu0 %v1782_v7  ;;  %1759 = vmatprep.subr.bf16.mxu1 %v1782_v7  ;;  %v244_v46 = vadd.f32 %v2020_v27, %v169_v38  ;;  %v247_v48 = vadd.f32 %v2022_v28, %v172_v39  ;;  %v249_v49 = vadd.f32 %v2022_v28, %v174_v40  ;;  %v103_v3 = vunpack.c.h.bf16 %v30_v53  ;;  %v41_v31 = vld [vmem:[%s2636_s0 + $0x80] sm:$0xff] }
   0xd   :  { %v246_v50 = vadd.f32 %v2020_v27, %v171_v41  ;;  %v248_v51 = vadd.f32 %v2020_v27, %v173_v42  ;;  %v307_v55 = vmax.f32 %v243_v43, 0.0  ;;  %v309_v56 = vmax.f32 %v245_v44, 0.0 }
   0xe   :  { %v306_v57 = vmax.f32 %v242_v45, 0.0  ;;  %v308_v58 = vmax.f32 %v244_v46, 0.0  ;;  %v311_v59 = vmax.f32 %v247_v48, 0.0  ;;  %v313_v60 = vmax.f32 %v249_v49, 0.0 }
   0xf   :  { %1651 = vmatpush3.bf16.msra.mxu0 %v1783_v9  ;;  %1767 = vmatpush3.bf16.msra.mxu1 %v1783_v9  ;;  %v310_v61 = vmax.f32 %v246_v50, 0.0  ;;  %v371_v0 = vpack.c.bf16 %v309_v56, %v307_v55  ;;  %v312_v1 = vmax.f32 %v248_v51, 0.0  ;;  %v100_v7 = vunpack.c.l.bf16 %v29_v52 }
  0x10   :  { %1652 = vmatprep.subr.bf16.mxu0 %v1784_v10  ;;  %1760 = vmatprep.subr.bf16.mxu1 %v1784_v10  ;;  %v370_v5 = vpack.c.bf16 %v308_v58, %v306_v57  ;;  %v373_v6 = vpack.c.bf16 %v313_v60, %v311_v59  ;;  %v102_v8 = vunpack.c.l.bf16 %v30_v53  ;;  %v176_v9 = vmul.f32 %v2018_v26, %v101_v2 }
  0x11   :  { %536 = vmatprep.mubr.bf16.mxu0 %v371_v0  ;;  %v178_v10 = vmul.f32 %v2018_v26, %v103_v3  ;;  %v175_v13 = vmul.f32 %v2016_v25, %v100_v7  ;;  %v106_v16 = vunpack.c.l.bf16 %v32_v63  ;;  %v180_v20 = vmul.f32 %v2018_v26, %v105_v11 }
  0x12   :  { %v251_v18 = vadd.f32 %v2022_v28, %v176_v9  ;;  %v372_v40 = vpack.c.bf16 %v312_v1, %v310_v61  ;;  %v109_v42 = vunpack.c.h.bf16 %v33_v17  ;;  %v111_v46 = vunpack.c.h.bf16 %v34_v22 }
  0x13   :  { %1653 = vmatpush3.bf16.msra.mxu0 %v1785_v12  ;;  %1768 = vmatpush3.bf16.msra.mxu1 %v1785_v12  ;;  %v107_v12 = vunpack.c.h.bf16 %v32_v63  ;;  %v253_v19 = vadd.f32 %v2022_v28, %v178_v10  ;;  %v250_v23 = vadd.f32 %v2020_v27, %v175_v13  ;;  %v181_v30 = vmul.f32 %v2016_v25, %v106_v16 }
  0x14   :  { %1654 = vmatprep.subr.bf16.mxu0 %v1786_v14  ;;  %1761 = vmatprep.subr.bf16.mxu1 %v1786_v14  ;;  %v177_v14 = vmul.f32 %v2016_v25, %v102_v8  ;;  %v315_v32 = vmax.f32 %v251_v18, 0.0  ;;  %v184_v48 = vmul.f32 %v2018_v26, %v109_v42  ;;  %v124_v49 = vunpack.c.l.bf16 %v41_v31 }
  0x15   :  { %v182_v21 = vmul.f32 %v2018_v26, %v107_v12  ;;  %v317_v33 = vmax.f32 %v253_v19, 0.0  ;;  %v314_v37 = vmax.f32 %v250_v23, 0.0  ;;  %v256_v41 = vadd.f32 %v2020_v27, %v181_v30 }
  0x16   :  { %v252_v24 = vadd.f32 %v2020_v27, %v177_v14  ;;  %v125_v50 = vunpack.c.h.bf16 %v41_v31  ;;  %v186_v52 = vmul.f32 %v2018_v26, %v111_v46  ;;  %v126_v53 = vunpack.c.l.bf16 %v42_v36 }
  0x17   :  { %1655 = vmatpush3.bf16.msra.mxu0 %v1787_v29  ;;  %1769 = vmatpush3.bf16.msra.mxu1 %v1787_v29  ;;  %v179_v29 = vmul.f32 %v2016_v25, %v104_v15  ;;  %v257_v35 = vadd.f32 %v2022_v28, %v182_v21  ;;  %v375_v43 = vpack.c.bf16 %v317_v33, %v315_v32  ;;  %v320_v55 = vmax.f32 %v256_v41, 0.0 }
  0x18   :  { %1656 = vmatprep.subr.bf16.mxu0 %v1788_v34  ;;  %1762 = vmatprep.subr.bf16.mxu1 %v1788_v34  ;;  %v255_v34 = vadd.f32 %v2022_v28, %v180_v20  ;;  %v316_v38 = vmax.f32 %v252_v24, 0.0  ;;  %v200_v56 = vmul.f32 %v2018_v26, %v125_v50  ;;  %v108_v57 = vunpack.c.l.bf16 %v33_v17 }
  0x19   :  { %v254_v39 = vadd.f32 %v2020_v27, %v179_v29  ;;  %v321_v45 = vmax.f32 %v257_v35, 0.0  ;;  %v110_v58 = vunpack.c.l.bf16 %v34_v22 }
  0x1a   :  { %v319_v44 = vmax.f32 %v255_v34, 0.0 }
  0x1b   :  { %1657 = vmatpush3.bf16.msra.mxu0 %v1789_v47  ;;  %1770 = vmatpush3.bf16.msra.mxu1 %v1789_v47  ;;  %v2095_v47 = vpack.c.bf16 %v316_v38, %v314_v37  ;;  %v318_v51 = vmax.f32 %v254_v39, 0.0 }
  0x1c   :  { %1658 = vmatprep.subr.bf16.mxu0 %v1790_v54  ;;  %1763 = vmatprep.subr.bf16.mxu1 %v1790_v54  ;;  %v127_v54 = vunpack.c.h.bf16 %v42_v36 }
  0x1f   :  { %1659 = vmatpush3.bf16.msra.mxu0 %v1791_v4  ;;  %1771 = vmatpush3.bf16.msra.mxu1 %v1791_v4 }
  0x22   :  { %537 = vmatmul.mubr.bf16.vlgmr.msra.gmra.mxu0 %v370_v5 }
  0x23   :  { %544 = vmatprep.mubr.bf16.mxu0 %v373_v6 }
  0x24   :  { %11 = vsyncpa [#allocation3], 0  ;;  %v2101_v59 = vadd.f32 %v2022_v28, %v184_v48  ;;  %v202_v60 = vmul.f32 %v2018_v26, %v127_v54  ;;  %v199_v61 = vmul.f32 %v2016_v25, %v124_v49  ;;  %v201_v62 = vmul.f32 %v2016_v25, %v126_v53  ;;  %v35_v63 = vld [vmem:[%s2636_s0 + $0x50] sm:$0xff]  ;;  %v36_v8 = vld [vmem:[%s2636_s0 + $0x58] sm:$0xff] }
  0x25   :  { %v261_v0 = vadd.f32 %v2022_v28, %v186_v52  ;;  %v275_v1 = vadd.f32 %v2022_v28, %v200_v56  ;;  %v183_v2 = vmul.f32 %v2016_v25, %v108_v57  ;;  %v185_v3 = vmul.f32 %v2016_v25, %v110_v58  ;;  %v43_v13 = vld [vmem:[%s2636_s0 + $0x90] sm:$0xff]  ;;  %v44_v14 = vld [vmem:[%s2636_s0 + $0x98] sm:$0xff]  ;;  %v37_v39 = vld [vmem:[%s2636_s0 + $0x60] sm:$0xff] }
  0x26   :  { %v377_v4 = vpack.c.bf16 %v321_v45, %v319_v44  ;;  %v277_v5 = vadd.f32 %v2022_v28, %v202_v60  ;;  %v274_v6 = vadd.f32 %v2020_v27, %v199_v61  ;;  %v276_v7 = vadd.f32 %v2020_v27, %v201_v62  ;;  %v38_v49 = vld [vmem:[%s2636_s0 + $0x68] sm:$0xff]  ;;  %v45_v58 = vld [vmem:[%s2636_s0 + $0xa0] sm:$0xff] }
  0x27   :  { %v2119_v9 = vpack.c.bf16 %v320_v55, %v318_v51  ;;  %v339_v10 = vmax.f32 %v275_v1, 0.0  ;;  %v258_v11 = vadd.f32 %v2020_v27, %v183_v2  ;;  %v113_v12 = vunpack.c.h.bf16 %v35_v63 }
  0x28   :  { %v323_v15 = vmax.f32 %v2101_v59, 0.0  ;;  %v341_v16 = vmax.f32 %v277_v5, 0.0  ;;  %v338_v17 = vmax.f32 %v274_v6, 0.0  ;;  %v340_v18 = vmax.f32 %v276_v7, 0.0 }
  0x29   :  { %v325_v19 = vmax.f32 %v261_v0, 0.0  ;;  %v260_v20 = vadd.f32 %v2020_v27, %v185_v3  ;;  %v115_v21 = vunpack.c.h.bf16 %v36_v8  ;;  %v188_v22 = vmul.f32 %v2018_v26, %v113_v12 }
  0x2a   :  { %545 = vmatmul.mubr.bf16.gmra.mxu0 %v372_v40  ;;  %v387_v23 = vpack.c.bf16 %v341_v16, %v339_v10  ;;  %v386_v24 = vpack.c.bf16 %v340_v18, %v338_v17  ;;  %v129_v29 = vunpack.c.h.bf16 %v43_v13  ;;  %v131_v30 = vunpack.c.h.bf16 %v44_v14  ;;  %v39_v16 = vld [vmem:[%s2636_s0 + $0x70] sm:$0xff] }
  0x2b   :  { %552 = vmatprep.mubr.bf16.mxu0 %v375_v43  ;;  %v322_v31 = vmax.f32 %v258_v11, 0.0  ;;  %v190_v32 = vmul.f32 %v2018_v26, %v115_v21  ;;  %v263_v33 = vadd.f32 %v2022_v28, %v188_v22  ;;  %v112_v34 = vunpack.c.l.bf16 %v35_v63 }
  0x2c   :  { %600 = vmatprep.mubr.bf16.mxu1 %v387_v23  ;;  %v204_v35 = vmul.f32 %v2018_v26, %v129_v29  ;;  %v206_v36 = vmul.f32 %v2018_v26, %v131_v30  ;;  %v114_v37 = vunpack.c.l.bf16 %v36_v8  ;;  %v128_v38 = vunpack.c.l.bf16 %v43_v13  ;;  %v40_v29 = vld [vmem:[%s2636_s0 + $0x78] sm:$0xff] }
  0x2d   :  { %v324_v40 = vmax.f32 %v260_v20, 0.0  ;;  %601 = vmatmul.mubr.bf16.vlgmr.msra.gmra.mxu1 %v386_v24  ;;  %v265_v41 = vadd.f32 %v2022_v28, %v190_v32  ;;  %v187_v42 = vmul.f32 %v2016_v25, %v112_v34  ;;  %v130_v43 = vunpack.c.l.bf16 %v44_v14 }
  0x2e   :  { %v279_v44 = vadd.f32 %v2022_v28, %v204_v35  ;;  %v281_v45 = vadd.f32 %v2022_v28, %v206_v36  ;;  %v189_v46 = vmul.f32 %v2016_v25, %v114_v37  ;;  %v203_v48 = vmul.f32 %v2016_v25, %v128_v38  ;;  %v48_v38 = vld [vmem:[%s2636_s0 + $0xb8] sm:$0xff] }
  0x2f   :  { %v327_v50 = vmax.f32 %v263_v33, 0.0  ;;  %v329_v51 = vmax.f32 %v265_v41, 0.0  ;;  %v205_v52 = vmul.f32 %v2016_v25, %v130_v43  ;;  %v117_v53 = vunpack.c.h.bf16 %v37_v39  ;;  %v47_v33 = vld [vmem:[%s2636_s0 + $0xb0] sm:$0xff] }
  0x30   :  { %v343_v54 = vmax.f32 %v279_v44, 0.0  ;;  %v345_v55 = vmax.f32 %v281_v45, 0.0  ;;  %v2150_v56 = vadd.f32 %v2020_v27, %v187_v42  ;;  %v278_v57 = vadd.f32 %v2020_v27, %v203_v48 }
  0x31   :  { %v379_v59 = vpack.c.bf16 %v325_v19, %v323_v15  ;;  %v2159_v60 = vpack.c.bf16 %v324_v40, %v322_v31  ;;  %v280_v61 = vadd.f32 %v2020_v27, %v205_v52  ;;  %v119_v62 = vunpack.c.h.bf16 %v38_v49 }
  0x32   :  { %553 = vmatmul.mubr.bf16.gmra.mxu0 %v2095_v47  ;;  %v46_v47 = vld [vmem:[%s2636_s0 + $0xa8] sm:$0xff]  ;;  %v389_v63 = vpack.c.bf16 %v345_v55, %v343_v54  ;;  %v2163_v0 = vadd.f32 %v2020_v27, %v189_v46  ;;  %v342_v1 = vmax.f32 %v278_v57, 0.0  ;;  %v192_v2 = vmul.f32 %v2018_v26, %v117_v53 }
  0x33   :  { %560 = vmatprep.mubr.bf16.mxu0 %v377_v4  ;;  %v344_v3 = vmax.f32 %v280_v61, 0.0  ;;  %v194_v4 = vmul.f32 %v2018_v26, %v119_v62  ;;  %v133_v5 = vunpack.c.h.bf16 %v45_v58  ;;  %v135_v6 = vunpack.c.h.bf16 %v46_v47 }
  0x34   :  { %v381_v7 = vpack.c.bf16 %v329_v51, %v327_v50  ;;  %608 = vmatprep.mubr.bf16.mxu1 %v389_v63  ;;  %v326_v8 = vmax.f32 %v2150_v56, 0.0  ;;  %v116_v10 = vunpack.c.l.bf16 %v37_v39  ;;  %v118_v11 = vunpack.c.l.bf16 %v38_v49 }
  0x35   :  { %v388_v12 = vpack.c.bf16 %v344_v3, %v342_v1  ;;  %v267_v13 = vadd.f32 %v2022_v28, %v192_v2  ;;  %v208_v14 = vmul.f32 %v2018_v26, %v133_v5  ;;  %v210_v15 = vmul.f32 %v2018_v26, %v135_v6  ;;  %v50_v5 = vld [vmem:[%s2636_s0 + $0xc8] sm:$0xff] }
  0x36   :  { %v269_v17 = vadd.f32 %v2022_v28, %v194_v4  ;;  %v191_v18 = vmul.f32 %v2016_v25, %v116_v10  ;;  %v193_v19 = vmul.f32 %v2016_v25, %v118_v11  ;;  %v132_v20 = vunpack.c.l.bf16 %v45_v58 }
  0x37   :  { %v328_v21 = vmax.f32 %v2163_v0, 0.0  ;;  %609 = vmatmul.mubr.bf16.gmra.mxu1 %v388_v12  ;;  %v283_v22 = vadd.f32 %v2022_v28, %v208_v14  ;;  %v285_v23 = vadd.f32 %v2022_v28, %v210_v15  ;;  %v134_v24 = vunpack.c.l.bf16 %v46_v47 }
  0x38   :  { %v266_v30 = vadd.f32 %v2020_v27, %v191_v18  ;;  %v268_v31 = vadd.f32 %v2020_v27, %v193_v19  ;;  %v207_v32 = vmul.f32 %v2016_v25, %v132_v20  ;;  %v331_v34 = vmax.f32 %v267_v13, 0.0  ;;  %v51_v18 = vld [vmem:[%s2636_s0 + $0xd0] sm:$0xff] }
  0x39   :  { %v347_v35 = vmax.f32 %v283_v22, 0.0  ;;  %v349_v36 = vmax.f32 %v285_v23, 0.0  ;;  %v209_v37 = vmul.f32 %v2016_v25, %v134_v24  ;;  %v333_v39 = vmax.f32 %v269_v17, 0.0  ;;  %v52_v23 = vld [vmem:[%s2636_s0 + $0xd8] sm:$0xff] }
  0x3a   :  { %561 = vmatmul.mubr.bf16.gmra.mxu0 %v2119_v9  ;;  %v121_v9 = vunpack.c.h.bf16 %v39_v16  ;;  %v330_v40 = vmax.f32 %v266_v30, 0.0  ;;  %v282_v41 = vadd.f32 %v2020_v27, %v207_v32  ;;  %v123_v42 = vunpack.c.h.bf16 %v40_v29 }
  0x3b   :  { %568 = vmatprep.mubr.bf16.mxu0 %v379_v59  ;;  %v391_v43 = vpack.c.bf16 %v349_v36, %v347_v35  ;;  %v284_v44 = vadd.f32 %v2020_v27, %v209_v37  ;;  %v137_v46 = vunpack.c.h.bf16 %v47_v33  ;;  %v332_v48 = vmax.f32 %v268_v31, 0.0  ;;  %v49_v59 = vld [vmem:[%s2636_s0 + $0xc0] sm:$0xff] }
  0x3c   :  { %v196_v45 = vmul.f32 %v2018_v26, %v121_v9  ;;  %v346_v49 = vmax.f32 %v282_v41, 0.0  ;;  %v198_v50 = vmul.f32 %v2018_v26, %v123_v42  ;;  %v139_v51 = vunpack.c.h.bf16 %v48_v38 }
  0x3d   :  { %616 = vmatprep.mubr.bf16.mxu1 %v391_v43  ;;  %v348_v52 = vmax.f32 %v284_v44, 0.0  ;;  %v212_v54 = vmul.f32 %v2018_v26, %v137_v46  ;;  %v120_v55 = vunpack.c.l.bf16 %v39_v16  ;;  %v122_v58 = vunpack.c.l.bf16 %v40_v29 }
  0x3e   :  { %v271_v53 = vadd.f32 %v2022_v28, %v196_v45  ;;  %v273_v56 = vadd.f32 %v2022_v28, %v198_v50  ;;  %v214_v57 = vmul.f32 %v2018_v26, %v139_v51  ;;  %v136_v47 = vunpack.c.l.bf16 %v47_v33 }
  0x3f   :  { %v380_v61 = vpack.c.bf16 %v328_v21, %v326_v8  ;;  %v390_v62 = vpack.c.bf16 %v348_v52, %v346_v49  ;;  %v287_v63 = vadd.f32 %v2022_v28, %v212_v54  ;;  %v195_v0 = vmul.f32 %v2016_v25, %v120_v55  ;;  %v54_v49 = vld [vmem:[%s2636_s0 + $0xe8] sm:$0xff] }
  0x40   :  { %v335_v1 = vmax.f32 %v271_v53, 0.0  ;;  %v337_v2 = vmax.f32 %v273_v56, 0.0  ;;  %v289_v3 = vadd.f32 %v2022_v28, %v214_v57  ;;  %v138_v4 = vunpack.c.l.bf16 %v48_v38 }
  0x41   :  { %v383_v6 = vpack.c.bf16 %v333_v39, %v331_v34  ;;  %617 = vmatmul.mubr.bf16.gmra.mxu1 %v390_v62  ;;  %v351_v10 = vmax.f32 %v287_v63, 0.0  ;;  %v141_v8 = vunpack.c.h.bf16 %v49_v59  ;;  %v382_v11 = vpack.c.bf16 %v332_v48, %v330_v40  ;;  %v53_v39 = vld [vmem:[%s2636_s0 + $0xe0] sm:$0xff]  ;;  %v55_v62 = vld [vmem:[%s2636_s0 + $0xf0] sm:$0xff] }
  0x42   :  { %569 = vmatmul.mubr.bf16.gmra.mxu0 %v2159_v60  ;;  %v211_v60 = vmul.f32 %v2016_v25, %v136_v47  ;;  %v353_v12 = vmax.f32 %v289_v3, 0.0  ;;  %v197_v13 = vmul.f32 %v2016_v25, %v122_v58  ;;  %v2216_v14 = vadd.f32 %v2020_v27, %v195_v0  ;;  %v56_v3 = vld [vmem:[%s2636_s0 + $0xf8] sm:$0xff] }
  0x43   :  { %576 = vmatprep.mubr.bf16.mxu0 %v381_v7  ;;  %v213_v7 = vmul.f32 %v2016_v25, %v138_v4  ;;  %v143_v16 = vunpack.c.h.bf16 %v50_v5  ;;  %v216_v17 = vmul.f32 %v2018_v26, %v141_v8  ;;  %v385_v19 = vpack.c.bf16 %v337_v2, %v335_v1 }
  0x44   :  { %v286_v15 = vadd.f32 %v2020_v27, %v211_v60  ;;  %v393_v20 = vpack.c.bf16 %v353_v12, %v351_v10  ;;  %v140_v22 = vunpack.c.l.bf16 %v49_v59  ;;  %v142_v31 = vunpack.c.l.bf16 %v50_v5 }
  0x45   :  { %v288_v21 = vadd.f32 %v2020_v27, %v213_v7  ;;  %v218_v29 = vmul.f32 %v2018_v26, %v143_v16  ;;  %v291_v30 = vadd.f32 %v2022_v28, %v216_v17  ;;  %v272_v32 = vadd.f32 %v2020_v27, %v197_v13 }
  0x46   :  { %v350_v24 = vmax.f32 %v286_v15, 0.0  ;;  %624 = vmatprep.mubr.bf16.mxu1 %v393_v20  ;;  %v215_v33 = vmul.f32 %v2016_v25, %v140_v22  ;;  %v145_v34 = vunpack.c.h.bf16 %v51_v18  ;;  %v217_v37 = vmul.f32 %v2016_v25, %v142_v31 }
  0x47   :  { %v352_v9 = vmax.f32 %v288_v21, 0.0  ;;  %v293_v35 = vadd.f32 %v2022_v28, %v218_v29  ;;  %v355_v36 = vmax.f32 %v291_v30, 0.0  ;;  %v147_v38 = vunpack.c.h.bf16 %v52_v23 }
  0x48   :  { %v290_v41 = vadd.f32 %v2020_v27, %v215_v33  ;;  %v220_v42 = vmul.f32 %v2018_v26, %v145_v34  ;;  %v144_v43 = vunpack.c.l.bf16 %v51_v18  ;;  %v292_v45 = vadd.f32 %v2020_v27, %v217_v37 }
  0x49   :  { %v392_v40 = vpack.c.bf16 %v352_v9, %v350_v24  ;;  %v357_v44 = vmax.f32 %v293_v35, 0.0  ;;  %v222_v46 = vmul.f32 %v2018_v26, %v147_v38  ;;  %v146_v48 = vunpack.c.l.bf16 %v52_v23 }
  0x4a   :  { %577 = vmatmul.mubr.bf16.gmra.mxu0 %v380_v61  ;;  %v354_v50 = vmax.f32 %v290_v41, 0.0  ;;  %v295_v51 = vadd.f32 %v2022_v28, %v220_v42  ;;  %v219_v52 = vmul.f32 %v2016_v25, %v144_v43  ;;  %v149_v53 = vunpack.c.h.bf16 %v53_v39 }
  0x4b   :  { %584 = vmatprep.mubr.bf16.mxu0 %v383_v6  ;;  %625 = vmatmul.mubr.bf16.gmra.mxu1 %v392_v40  ;;  %v395_v54 = vpack.c.bf16 %v357_v44, %v355_v36  ;;  %v356_v55 = vmax.f32 %v292_v45, 0.0  ;;  %v297_v56 = vadd.f32 %v2022_v28, %v222_v46  ;;  %v221_v57 = vmul.f32 %v2016_v25, %v146_v48  ;;  %v1792_v44 = vld [vmem:[%s2641_s5 + $0xe0] ss:$16 sps:$4 sm:$0xff]   ;;  %v1795_v45 = vld [vmem:[%s2641_s5 + $0xe8] ss:$16 sps:$4 sm:$0xff]  }
  0x4c   :  { %v334_v58 = vmax.f32 %v2216_v14, 0.0  ;;  %v359_v47 = vmax.f32 %v295_v51, 0.0  ;;  %v151_v59 = vunpack.c.h.bf16 %v54_v49  ;;  %v224_v61 = vmul.f32 %v2018_v26, %v149_v53  ;;  %v1800_v46 = vld [vmem:[%s2641_s5 + $0xc4] ss:$16 sps:$4 sm:$0xff]   ;;  %v1803_v48 = vld [vmem:[%s2641_s5 + $0xcc] ss:$16 sps:$4 sm:$0xff]  }
  0x4d   :  { %v336_v63 = vmax.f32 %v272_v32, 0.0  ;;  %632 = vmatprep.mubr.bf16.mxu1 %v395_v54  ;;  %v361_v0 = vmax.f32 %v297_v56, 0.0  ;;  %v294_v1 = vadd.f32 %v2020_v27, %v219_v52  ;;  %v296_v2 = vadd.f32 %v2020_v27, %v221_v57  ;;  %v1806_v51 = vld [vmem:[%s2641_s5 + $0xa4] ss:$16 sps:$4 sm:$0xff]   ;;  %v1809_v52 = vld [vmem:[%s2641_s5 + $0xac] ss:$16 sps:$4 sm:$0xff]  }
  0x4e   :  { %v394_v4 = vpack.c.bf16 %v356_v55, %v354_v50  ;;  %v226_v5 = vmul.f32 %v2018_v26, %v151_v59  ;;  %v148_v6 = vunpack.c.l.bf16 %v53_v39  ;;  %v150_v10 = vunpack.c.l.bf16 %v54_v49  ;;  %v1798_v49 = vld [vmem:[%s2641_s5 + $0xc0] ss:$16 sps:$4 sm:$0xff]   ;;  %v1801_v50 = vld [vmem:[%s2641_s5 + $0xc8] ss:$16 sps:$4 sm:$0xff]   ;;  %v1812_v55 = vld [vmem:[%s2641_s5 + $0x84] ss:$16 sps:$4 sm:$0xff]  }
  0x4f   :  { %v397_v60 = vpack.c.bf16 %v361_v0, %v359_v47  ;;  %v299_v8 = vadd.f32 %v2022_v28, %v224_v61  ;;  %v153_v12 = vunpack.c.h.bf16 %v55_v62  ;;  %v155_v7 = vunpack.c.h.bf16 %v56_v3  ;;  %v1804_v53 = vld [vmem:[%s2641_s5 + $0xa0] ss:$16 sps:$4 sm:$0xff]   ;;  %v1807_v54 = vld [vmem:[%s2641_s5 + $0xa8] ss:$16 sps:$4 sm:$0xff]   ;;  %v1815_v56 = vld [vmem:[%s2641_s5 + $0x8c] ss:$16 sps:$4 sm:$0xff]  }
  0x50   :  { %v301_v13 = vadd.f32 %v2022_v28, %v226_v5  ;;  %v358_v14 = vmax.f32 %v294_v1, 0.0  ;;  %v360_v15 = vmax.f32 %v296_v2, 0.0  ;;  %v384_v16 = vpack.c.bf16 %v336_v63, %v334_v58  ;;  %v1810_v57 = vld [vmem:[%s2641_s5 + $0x80] ss:$16 sps:$4 sm:$0xff]   ;;  %v1813_v58 = vld [vmem:[%s2641_s5 + $0x88] ss:$16 sps:$4 sm:$0xff]  }
  0x51   :  { %v223_v17 = vmul.f32 %v2016_v25, %v148_v6  ;;  %v225_v18 = vmul.f32 %v2016_v25, %v150_v10  ;;  %v363_v20 = vmax.f32 %v299_v8, 0.0  ;;  %v230_v22 = vmul.f32 %v2018_v26, %v155_v7  ;;  %v1818_v47 = vld [vmem:[%s2641_s5 + $0x64] ss:$16 sps:$4 sm:$0xff]   ;;  %v1821_v59 = vld [vmem:[%s2641_s5 + $0x6c] ss:$16 sps:$4 sm:$0xff]  }
  0x52   :  { %585 = vmatmul.mubr.bf16.gmra.mxu0 %v382_v11  ;;  %v365_v21 = vmax.f32 %v301_v13, 0.0  ;;  %v228_v11 = vmul.f32 %v2018_v26, %v153_v12  ;;  %v396_v23 = vpack.c.bf16 %v360_v15, %v358_v14  ;;  %v152_v29 = vunpack.c.l.bf16 %v55_v62  ;;  %v1816_v61 = vld [vmem:[%s2641_s5 + $0x60] ss:$16 sps:$4 sm:$0xff]   ;;  %v1819_v62 = vld [vmem:[%s2641_s5 + $0x68] ss:$16 sps:$4 sm:$0xff]  }
  0x53   :  { %592 = vmatprep.mubr.bf16.mxu0 %v385_v19  ;;  %633 = vmatmul.mubr.bf16.gmra.mxu1 %v394_v4  ;;  %v298_v19 = vadd.f32 %v2020_v27, %v223_v17  ;;  %v300_v24 = vadd.f32 %v2020_v27, %v225_v18  ;;  %v154_v30 = vunpack.c.l.bf16 %v56_v3  ;;  %v305_v9 = vadd.f32 %v2022_v28, %v230_v22  ;;  %v1824_v63 = vld [vmem:[%s2641_s5 + $0x44] ss:$16 sps:$4 sm:$0xff]   ;;  %v1827_v0 = vld [vmem:[%s2641_s5 + $0x4c] ss:$16 sps:$4 sm:$0xff]   ;;  %v1822_v1 = vld [vmem:[%s2641_s5 + $0x40] ss:$16 sps:$4 sm:$0xff]  }
  0x54   :  { %640 = vmatprep.mubr.bf16.mxu1 %v397_v60  ;;  %v399_v31 = vpack.c.bf16 %v365_v21, %v363_v20  ;;  %v303_v32 = vadd.f32 %v2022_v28, %v228_v11  ;;  %v227_v35 = vmul.f32 %v2016_v25, %v152_v29  ;;  %v1825_v2 = vld [vmem:[%s2641_s5 + $0x48] ss:$16 sps:$4 sm:$0xff]   ;;  %v2347_v5 = vld [vmem:[%s2640_s4] ss:$0 sm:$0xff] }
  0x55   :  { %v362_v33 = vmax.f32 %v298_v19, 0.0  ;;  %v364_v34 = vmax.f32 %v300_v24, 0.0  ;;  %v229_v26 = vmul.f32 %v2016_v25, %v154_v30  ;;  %v369_v37 = vmax.f32 %v305_v9, 0.0  ;;  %v1794_v25 = vld [vmem:[%s2641_s5 + $0xe4] ss:$16 sps:$4 sm:$0xff]  }
  0x56   :  { %v367_v36 = vmax.f32 %v303_v32, 0.0  ;;  %v302_v39 = vadd.f32 %v2020_v27, %v227_v35  ;;  %1065 = vmatprep.subr.bf16.mxu1 %v1794_v25  ;;  %v1833_v25 = vld [vmem:[%s2641_s5 + $0x2c] ss:$16 sps:$4 sm:$0xff]  }
  0x57   :  { %v398_v38 = vpack.c.bf16 %v364_v34, %v362_v33  ;;  %v304_v40 = vadd.f32 %v2020_v27, %v229_v26  ;;  %v1797_v27 = vld [vmem:[%s2641_s5 + $0xec] ss:$16 sps:$4 sm:$0xff]   ;;  %1066 = vmatpush1.bf16.msra.mxu1 %v1792_v44 }
  0x58   :  { %v401_v41 = vpack.c.bf16 %v369_v37, %v367_v36  ;;  %v366_v42 = vmax.f32 %v302_v39, 0.0  ;;  %1258 = vmatprep.subr.bf16.mxu0 %v1797_v27  ;;  %1067 = vmatprep.subr.bf16.mxu1 %v1800_v46 }
  0x59   :  { %v368_v43 = vmax.f32 %v304_v40, 0.0  ;;  %1259 = vmatpush1.bf16.msra.mxu0 %v1795_v45 }
  0x5a   :  { %593 = vmatmul.mubr.bf16.gmra.mxu0 %v384_v16  ;;  %1260 = vmatprep.subr.bf16.mxu0 %v1803_v48 }
  0x5b   :  { %641 = vmatmul.mubr.bf16.gmra.mxu1 %v396_v23  ;;  %v400_v28 = vpack.c.bf16 %v368_v43, %v366_v42  ;;  %v1830_v42 = vld [vmem:[%s2641_s5 + $0x24] ss:$16 sps:$4 sm:$0xff]   ;;  %v1831_v43 = vld [vmem:[%s2641_s5 + $0x28] ss:$16 sps:$4 sm:$0xff]  }
  0x5c   :  { %648 = vmatprep.mubr.bf16.mxu1 %v399_v31  ;;  %1068 = vmatpush1.bf16.msra.mxu1 %v1798_v49 }
  0x5d   :  { %1261 = vmatpush1.bf16.msra.mxu0 %v1801_v50  ;;  %1069 = vmatprep.subr.bf16.mxu1 %v1806_v51 }
  0x5e   :  { %1262 = vmatprep.subr.bf16.mxu0 %v1809_v52 }
  0x60   :  { %1070 = vmatpush1.bf16.msra.mxu1 %v1804_v53 }
  0x61   :  { %1263 = vmatpush1.bf16.msra.mxu0 %v1807_v54  ;;  %1071 = vmatprep.subr.bf16.mxu1 %v1812_v55 }
  0x62   :  { %1264 = vmatprep.subr.bf16.mxu0 %v1815_v56  ;;  %v1834_v56 = vld [vmem:[%s2641_s5] ss:$16 sps:$4 sm:$0xff]  }
  0x63   :  { %649 = vmatmul.mubr.bf16.gmra.mxu1 %v398_v38 }
  0x64   :  { %656 = vmatprep.mubr.bf16.mxu1 %v401_v41  ;;  %1072 = vmatpush1.bf16.msra.mxu1 %v1810_v57  ;;  %v1828_v41 = vld [vmem:[%s2641_s5 + $0x20] ss:$16 sps:$4 sm:$0xff]   ;;  %v1836_v57 = vld [vmem:[%s2641_s5 + $0x4] ss:$16 sps:$4 sm:$0xff]  }
  0x65   :  { %1265 = vmatpush1.bf16.msra.mxu0 %v1813_v58  ;;  %1073 = vmatprep.subr.bf16.mxu1 %v1818_v47  ;;  %v1837_v58 = vld [vmem:[%s2641_s5 + $0x8] ss:$16 sps:$4 sm:$0xff]  }
  0x66   :  { %1266 = vmatprep.subr.bf16.mxu0 %v1821_v59 }
  0x68   :  { %1074 = vmatpush1.bf16.msra.mxu1 %v1816_v61  ;;  %v1839_v61 = vld [vmem:[%s2641_s5 + $0xc] ss:$16 sps:$4 sm:$0xff]   ;;  %s1927_s5 = smov [#allocation2]  }
  0x69   :  { %1267 = vmatpush1.bf16.msra.mxu0 %v1819_v62  ;;  %1075 = vmatprep.subr.bf16.mxu1 %v1824_v63  ;;  %s1584_s24 = sshll.u32 %s1927_s5, 4  ;;  %s1585_s24 = int_to_ptr.vmem [resolvable:$true] %s1584_s24 }
  0x6a   :  { %1268 = vmatprep.subr.bf16.mxu0 %v1827_v0  ;;  %s1904_s25 = scalar_lea.vmem %s1585_s24, 16384  ;;  %p1909_p1 = scmp.lt.s32.totalorder %s1585_s24, %s1585_s24 }
  0x6b   :  { %657 = vmatmul.mubr.bf16.gmra.mxu1 %v400_v28  ;;  %p1905_p0 = scmp.ne.s32.totalorder %s1585_s24, %s1904_s25  ;;  %p1910_p2 = scmp.lt.s32.totalorder %s1904_s25, %s1904_s25 }
  0x6c   :  { %1076 = vmatpush1.bf16.msra.mxu1 %v1822_v1 }
  0x6d   :  { %1269 = vmatpush1.bf16.msra.mxu0 %v1825_v2  ;;  %1077 = vmatprep.subr.bf16.mxu1 %v1830_v42  ;;  %p1911_p3 = por %p1910_p2, %p1909_p1 }
  0x6e   :  { %1270 = vmatprep.subr.bf16.mxu0 %v1833_v25 }
  0x6f   :  { %p1912_p4 = pnand %p1911_p3, %p1905_p0 }
  0x70   :  { %1078 = vmatpush1.bf16.msra.mxu1 %v1828_v41 }
  0x71   :  { %1271 = vmatpush1.bf16.msra.mxu0 %v1831_v43  ;;  %1079 = vmatprep.subr.bf16.mxu1 %v1836_v57 }
  0x72   :  { %1272 = vmatprep.subr.bf16.mxu0 %v1839_v61 }
  0x74   :  { %1080 = vmatpush1.bf16.msra.mxu1 %v1834_v56 }
  0x75   :  { %1273 = vmatpush1.bf16.msra.mxu0 %v1837_v58 }
  0xe2   :  { %v1660_v3 = vpop.f32.mrf.mxu0 }
  0xe4   :  { %v1661_v4 = vpop.f32.mrf.mxu0 }
  0xe5   :  { %v1662_v6 = vadd.f32 %v1661_v4, %v1660_v3 }
  0xe6   :  { %v1663_v10 = vpop.f32.mrf.mxu0 }
  0xe7   :  { %v2350_v60 = vadd.f32 %v1662_v6, %v2347_v5 }
  0xe8   :  { %v1664_v8 = vpop.f32.mrf.mxu0 }
  0xe9   :  { %v1665_v12 = vadd.f32 %v1664_v8, %v1663_v10  ;;  %v665_v13 = vmul.f32 %v2350_v60, %v2350_v60 }
  0xea   :  { %v1666_v7 = vpop.f32.mrf.mxu0 }
  0xeb   :  { %v2355_v14 = vadd.f32 %v1665_v12, %v2347_v5  ;;  %697 = vadd.xlane.f32.xlu0 %v665_v13 }
  0xec   :  { %v1667_v15 = vpop.f32.mrf.mxu0 }
  0xed   :  { %v1668_v16 = vadd.f32 %v1667_v15, %v1666_v7  ;;  %v666_v17 = vmul.f32 %v2355_v14, %v2355_v14  ;;  %v2362_v11 = vpop.f32.mrf.mxu1  ;;  %v1926_v15 = vmov 0  }
  0xee   :  { %v1669_v18 = vpop.f32.mrf.mxu0  ;;  %1097 = vmatprep.mubr.bf16.mxu1 %v1926_v15  ;;  %1290 = vmatprep.mubr.bf16.mxu0 %v1926_v15 }
  0xef   :  { %699 = vadd.xlane.f32.xlu0 %v666_v17  ;;  %v2360_v20 = vadd.f32 %v1668_v16, %v2347_v5  ;;  %v2366_v24 = vpop.f32.mrf.mxu1 }
  0xf0   :  { %v1670_v21 = vpop.f32.mrf.mxu0 }
  0xf1   :  { %v1671_v22 = vadd.f32 %v1670_v21, %v1669_v18  ;;  %v667_v23 = vmul.f32 %v2360_v20, %v2360_v20  ;;  %v2371_v31 = vpop.f32.mrf.mxu1 }
  0xf2   :  { %v1672_v19 = vpop.f32.mrf.mxu0 }
  0xf3   :  { %v2369_v29 = vadd.f32 %v1671_v22, %v2347_v5  ;;  %701 = vadd.xlane.f32.xlu1 %v667_v23  ;;  %v2375_v34 = vpop.f32.mrf.mxu1 }
  0xf4   :  { %v1673_v30 = vpop.f32.mrf.mxu0 }
  0xf5   :  { %v1674_v32 = vadd.f32 %v1673_v30, %v1672_v19  ;;  %v668_v9 = vmul.f32 %v2369_v29, %v2369_v29 }
  0xf6   :  { %v1675_v33 = vpop.f32.mrf.mxu0 }
  0xf7   :  { %v2378_v35 = vadd.f32 %v1674_v32, %v2347_v5  ;;  %703 = vadd.xlane.f32.xlu1 %v668_v9  ;;  %v2382_v39 = vpop.f32.mrf.mxu1 }
  0xf8   :  { %v1676_v26 = vpop.f32.mrf.mxu0 }
  0xf9   :  { %v1677_v36 = vadd.f32 %v1676_v26, %v1675_v33  ;;  %v669_v37 = vmul.f32 %v2378_v35, %v2378_v35  ;;  %v2396_v44 = vpop.f32.mrf.mxu1 }
  0xfa   :  { %v1678_v38 = vpop.f32.mrf.mxu0 }
  0xfb   :  { %v2385_v40 = vadd.f32 %v1677_v36, %v2347_v5  ;;  %705 = vadd.xlane.f32.xlu0 %v669_v37  ;;  %v2403_v48 = vpop.f32.mrf.mxu1 }
  0xfc   :  { %v1679_v28 = vpop.f32.mrf.mxu0 }
  0xfd   :  { %v1680_v45 = vadd.f32 %v1679_v28, %v1678_v38  ;;  %v670_v27 = vmul.f32 %v2385_v40, %v2385_v40  ;;  %v2408_v51 = vpop.f32.mrf.mxu1 }
  0xfe   :  { %v1681_v46 = vpop.f32.mrf.mxu0 }
  0xff   :  { %v2406_v49 = vadd.f32 %v1680_v45, %v2347_v5  ;;  %707 = vadd.xlane.f32.xlu1 %v670_v27 }
 0x100   :  { %v1682_v50 = vpop.f32.mrf.mxu0 }
 0x101   :  { %v1683_v52 = vadd.f32 %v1682_v50, %v1681_v46  ;;  %v671_v53 = vmul.f32 %v2406_v49, %v2406_v49  ;;  %v2424_v59 = vpop.f32.mrf.mxu1 }
 0x102   :  { %v1684_v54 = vpop.f32.mrf.mxu0 }
 0x103   :  { %v2413_v55 = vadd.f32 %v1683_v52, %v2347_v5  ;;  %709 = vadd.xlane.f32.xlu0 %v671_v53  ;;  %v2431_v1 = vpop.f32.mrf.mxu1  ;;  %v1710_v53 = vadd.f32 %v2366_v24, %v2362_v11 }
 0x104   :  { %v1685_v47 = vpop.f32.mrf.mxu0 }
 0x105   :  { %v1686_v62 = vadd.f32 %v1685_v47, %v1684_v54  ;;  %v672_v63 = vmul.f32 %v2413_v55, %v2413_v55  ;;  %v2436_v4 = vpop.f32.mrf.mxu1 }
 0x106   :  { %v1687_v0 = vpop.f32.mrf.mxu0 }
 0x107   :  { %v2434_v2 = vadd.f32 %v1686_v62, %v2347_v5  ;;  %711 = vadd.xlane.f32.xlu1 %v672_v63  ;;  %v2440_v12 = vpop.f32.mrf.mxu1  ;;  %v2472_v63 = vadd.f32 %v1710_v53, %v2347_v5 }
 0x108   :  { %v1688_v3 = vpop.f32.mrf.mxu0 }
 0x109   :  { %v1689_v6 = vadd.f32 %v1688_v3, %v1687_v0  ;;  %v673_v10 = vmul.f32 %v2434_v2, %v2434_v2  ;;  %v1716_v0 = vadd.f32 %v2396_v44, %v2382_v39  ;;  %v1722_v39 = vadd.f32 %v2431_v1, %v2424_v59 }
 0x10a   :  { %v1690_v8 = vpop.f32.mrf.mxu0  ;;  %v1725_v59 = vadd.f32 %v2440_v12, %v2436_v4 }
 0x10b   :  { %v2443_v13 = vadd.f32 %v1689_v6, %v2347_v5  ;;  %713 = vadd.xlane.f32.xlu0 %v673_v10  ;;  %v1726_v18 = vpop.f32.mrf.mxu1  ;;  %v1713_v6 = vadd.f32 %v2375_v34, %v2371_v31  ;;  %v681_v31 = vmul.f32 %v2472_v63, %v2472_v63 }
 0x10c   :  { %v1691_v7 = vpop.f32.mrf.mxu0 }
 0x10d   :  { %v1692_v16 = vadd.f32 %v1691_v7, %v1690_v8  ;;  %v674_v17 = vmul.f32 %v2443_v13, %v2443_v13  ;;  %v1727_v23 = vpop.f32.mrf.mxu1 }
 0x10e   :  { %v1693_v21 = vpop.f32.mrf.mxu0  ;;  %v1728_v1 = vadd.f32 %v1727_v23, %v1726_v18 }
 0x10f   :  { %v2450_v22 = vadd.f32 %v1692_v16, %v2347_v5  ;;  %715 = vadd.xlane.f32.xlu1 %v674_v17  ;;  %v1729_v9 = vpop.f32.mrf.mxu1  ;;  %v1719_v16 = vadd.f32 %v2408_v51, %v2403_v48  ;;  %v2486_v17 = vadd.f32 %v1716_v0, %v2347_v5 }
 0x110   :  { %v1694_v19 = vpop.f32.mrf.mxu0 }
 0x111   :  { %v1695_v30 = vadd.f32 %v1694_v19, %v1693_v21  ;;  %v675_v32 = vmul.f32 %v2450_v22, %v2450_v22  ;;  %v1730_v36 = vpop.f32.mrf.mxu1  ;;  %v2496_v21 = vadd.f32 %v1713_v6, %v2347_v5  ;;  %v2501_v19 = vadd.f32 %v1719_v16, %v2347_v5 }
 0x112   :  { %v1696_v33 = vpop.f32.mrf.mxu0  ;;  %v1731_v12 = vadd.f32 %v1730_v36, %v1729_v9 }
 0x113   :  { %v2455_v26 = vadd.f32 %v1695_v30, %v2347_v5  ;;  %717 = vadd.xlane.f32.xlu0 %v675_v32  ;;  %v1732_v42 = vpop.f32.mrf.mxu1  ;;  %v2506_v30 = vadd.f32 %v1722_v39, %v2347_v5  ;;  %v683_v32 = vmul.f32 %v2486_v17, %v2486_v17  ;;  %v684_v4 = vmul.f32 %v2501_v19, %v2501_v19 }
 0x114   :  { %v1697_v37 = vpop.f32.mrf.mxu0 }
 0x115   :  { %v1698_v38 = vadd.f32 %v1697_v37, %v1696_v33  ;;  %v676_v41 = vmul.f32 %v2455_v26, %v2455_v26  ;;  %v1733_v25 = vpop.f32.mrf.mxu1  ;;  %v682_v37 = vmul.f32 %v2496_v21, %v2496_v21  ;;  %v685_v23 = vmul.f32 %v2506_v30, %v2506_v30 }
 0x116   :  { %v1699_v43 = vpop.f32.mrf.mxu0  ;;  %v1734_v18 = vadd.f32 %v1733_v25, %v1732_v42 }
 0x117   :  { %v2460_v28 = vadd.f32 %v1698_v38, %v2347_v5  ;;  %719 = vadd.xlane.f32.xlu1 %v676_v41  ;;  %v1735_v50 = vpop.f32.mrf.mxu1  ;;  %v2513_v41 = vadd.f32 %v1725_v59, %v2347_v5 }
 0x118   :  { %v1700_v45 = vpop.f32.mrf.mxu0  ;;  %v2530_v9 = vadd.f32 %v1734_v18, %v2347_v5 }
 0x119   :  { %v1701_v27 = vadd.f32 %v1700_v45, %v1699_v43  ;;  %v677_v46 = vmul.f32 %v2460_v28, %v2460_v28  ;;  %v1736_v56 = vpop.f32.mrf.mxu1  ;;  %v2516_v43 = vadd.f32 %v1728_v1, %v2347_v5 }
 0x11a   :  { %v1702_v52 = vpop.f32.mrf.mxu0 }
 0x11b   :  { %v2467_v54 = vadd.f32 %v1701_v27, %v2347_v5  ;;  %721 = vadd.xlane.f32.xlu0 %v677_v46  ;;  %v1738_v61 = vpop.f32.mrf.mxu1  ;;  %v1737_v46 = vadd.f32 %v1736_v56, %v1735_v50  ;;  %v687_v53 = vmul.f32 %v2516_v43, %v2516_v43 }
 0x11c   :  { %v1703_v57 = vpop.f32.mrf.mxu0 }
 0x11d   :  { %v1704_v58 = vadd.f32 %v1703_v57, %v1702_v52  ;;  %v678_v47 = vmul.f32 %v2467_v54, %v2467_v54  ;;  %v1739_v24 = vpop.f32.mrf.mxu1  ;;  %v686_v52 = vmul.f32 %v2513_v41, %v2513_v41  ;;  %v2527_v57 = vadd.f32 %v1731_v12, %v2347_v5 }
 0x11e   :  { %v1705_v62 = vpop.f32.mrf.mxu0  ;;  %v1740_v36 = vadd.f32 %v1739_v24, %v1738_v61  ;;  %v2533_v25 = vadd.f32 %v1737_v46, %v2347_v5 }
 0x11f   :  { %v2477_v11 = vadd.f32 %v1704_v58, %v2347_v5  ;;  %723 = vadd.xlane.f32.xlu1 %v678_v47  ;;  %v1741_v7 = vpop.f32.mrf.mxu1  ;;  %v688_v47 = vmul.f32 %v2527_v57, %v2527_v57 }
 0x120   :  { %v1706_v3 = vpop.f32.mrf.mxu0  ;;  %v2536_v58 = vadd.f32 %v1740_v36, %v2347_v5 }
 0x121   :  { %v1707_v10 = vadd.f32 %v1706_v3, %v1705_v62  ;;  %v679_v8 = vmul.f32 %v2477_v11, %v2477_v11  ;;  %v1742_v34 = vpop.f32.mrf.mxu1  ;;  %v689_v62 = vmul.f32 %v2530_v9, %v2530_v9  ;;  %v690_v3 = vmul.f32 %v2533_v25, %v2533_v25 }
 0x122   :  { %v1743_v50 = vadd.f32 %v1742_v34, %v1741_v7 }
 0x123   :  { %v2491_v44 = vadd.f32 %v1707_v10, %v2347_v5  ;;  %725 = vadd.xlane.f32.xlu0 %v679_v8  ;;  %v1744_v51 = vpop.f32.mrf.mxu1  ;;  %v691_v10 = vmul.f32 %v2536_v58, %v2536_v58 }
 0x124   :  { %v2543_v0 = vadd.f32 %v1743_v50, %v2347_v5 }
 0x125   :  { %v680_v48 = vmul.f32 %v2491_v44, %v2491_v44  ;;  %v1745_v33 = vpop.f32.mrf.mxu1 }
 0x126   :  { %v1746_v56 = vadd.f32 %v1745_v33, %v1744_v51  ;;  %v692_v16 = vmul.f32 %v2543_v0, %v2543_v0 }
 0x127   :  { %727 = vadd.xlane.f32.xlu1 %v680_v48  ;;  %729 = vadd.xlane.f32.xlu0 %v681_v31  ;;  %v1747_v38 = vpop.f32.mrf.mxu1 }
 0x128   :  { %v2546_v24 = vadd.f32 %v1746_v56, %v2347_v5 }
 0x129   :  { %v1748_v45 = vpop.f32.mrf.mxu1 }
 0x12a   :  { %v1749_v6 = vadd.f32 %v1748_v45, %v1747_v38  ;;  %v693_v39 = vmul.f32 %v2546_v24, %v2546_v24 }
 0x12b   :  { %731 = vadd.xlane.f32.xlu1 %v682_v37  ;;  %733 = vadd.xlane.f32.xlu0 %v683_v32  ;;  %v1750_v27 = vpop.f32.mrf.mxu1 }
 0x12c   :  { %v2557_v31 = vadd.f32 %v1749_v6, %v2347_v5 }
 0x12d   :  { %v1751_v42 = vpop.f32.mrf.mxu1 }
 0x12e   :  { %v1752_v8 = vadd.f32 %v1751_v42, %v1750_v27  ;;  %v694_v59 = vmul.f32 %v2557_v31, %v2557_v31 }
 0x12f   :  { %735 = vadd.xlane.f32.xlu1 %v684_v4  ;;  %737 = vadd.xlane.f32.xlu0 %v685_v23  ;;  %v1753_v61 = vpop.f32.mrf.mxu1 }
 0x130   :  { %v2560_v34 = vadd.f32 %v1752_v8, %v2347_v5 }
 0x131   :  { %v1754_v7 = vpop.f32.mrf.mxu1 }
 0x132   :  { %v1755_v48 = vadd.f32 %v1754_v7, %v1753_v61  ;;  %v695_v1 = vmul.f32 %v2560_v34, %v2560_v34 }
 0x133   :  { %739 = vadd.xlane.f32.xlu1 %v686_v52  ;;  %741 = vadd.xlane.f32.xlu0 %v687_v53 }
 0x134   :  { %v2563_v51 = vadd.f32 %v1755_v48, %v2347_v5 }
 0x136   :  { %v696_v32 = vmul.f32 %v2563_v51, %v2563_v51 }
 0x137   :  { %743 = vadd.xlane.f32.xlu1 %v688_v47  ;;  %745 = vadd.xlane.f32.xlu0 %v689_v62 }
 0x13b   :  { %747 = vadd.xlane.f32.xlu1 %v690_v3  ;;  %749 = vadd.xlane.f32.xlu0 %v691_v10 }
 0x13f   :  { %751 = vadd.xlane.f32.xlu1 %v692_v16  ;;  %753 = vadd.xlane.f32.xlu0 %v693_v39 }
 0x143   :  { %755 = vadd.xlane.f32.xlu1 %v694_v59  ;;  %757 = vadd.xlane.f32.xlu0 %v695_v1 }
 0x147   :  { %759 = vadd.xlane.f32.xlu1 %v696_v32 }
 0x174   :  { %v698_v33 = vpop.xlane.xlu0 %697 }
 0x175   :  { %v761_v37 = vmax.f32 %v698_v33, 1e-24 }
 0x177   :  { %1840 = vrsqrt.f32 %v761_v37 }
 0x178   :  { %v700_v38 = vpop.xlane.xlu0 %699 }
 0x179   :  { %v762_v4 = vmax.f32 %v700_v38, 1e-24 }
 0x17b   :  { %1842 = vrsqrt.f32 %v762_v4 }
 0x17c   :  { %v702_v5 = vpop.xlane.xlu1 %701 }
 0x17d   :  { %v763_v12 = vmax.f32 %v702_v5, 1e-24 }
 0x17f   :  { %1844 = vrsqrt.f32 %v763_v12 }
 0x180   :  { %v704_v18 = vpop.xlane.xlu1 %703 }
 0x181   :  { %v764_v23 = vmax.f32 %v704_v18, 1e-24 }
 0x183   :  { %1846 = vrsqrt.f32 %v764_v23 }
 0x184   :  { %v706_v45 = vpop.xlane.xlu0 %705  ;;  %v1841_v46 = vpop.eup %1840 }
 0x185   :  { %v765_v27 = vmax.f32 %v706_v45, 1e-24  ;;  %v825_v42 = vmul.f32 %v1841_v46, %v2350_v60 }
 0x187   :  { %1848 = vrsqrt.f32 %v765_v27 }
 0x188   :  { %v1843_v52 = vpop.eup %1842  ;;  %v708_v53 = vpop.xlane.xlu1 %707 }
 0x189   :  { %v766_v36 = vmax.f32 %v708_v53, 1e-24  ;;  %v826_v50 = vmul.f32 %v1843_v52, %v2355_v14 }
 0x18b   :  { %1850 = vrsqrt.f32 %v766_v36  ;;  %v857_v56 = vpack.c.bf16 %v826_v50, %v825_v42 }
 0x18c   :  { %v710_v47 = vpop.xlane.xlu0 %709  ;;  %v1845_v61 = vpop.eup %1844 }
 0x18d   :  { %v767_v62 = vmax.f32 %v710_v47, 1e-24  ;;  %1098 = vmatmul.mubr.bf16.vlgmr.msra.gmra.mxu1 %v857_v56  ;;  %1291 = vmatmul.mubr.bf16.vlgmr.msra.gmra.mxu0 %v857_v56  ;;  %v827_v8 = vmul.f32 %v1845_v61, %v2360_v20 }
 0x18e   :  { %1107 = vmatprep.mubr.bf16.mxu1 %v1926_v15  ;;  %1300 = vmatprep.mubr.bf16.mxu0 %v1926_v15 }
 0x18f   :  { %1852 = vrsqrt.f32 %v767_v62 }
 0x190   :  { %v1847_v3 = vpop.eup %1846  ;;  %v712_v6 = vpop.xlane.xlu1 %711 }
 0x191   :  { %v768_v10 = vmax.f32 %v712_v6, 1e-24  ;;  %v828_v60 = vmul.f32 %v1847_v3, %v2369_v29 }
 0x193   :  { %1854 = vrsqrt.f32 %v768_v10  ;;  %v858_v14 = vpack.c.bf16 %v828_v60, %v827_v8 }
 0x194   :  { %v714_v7 = vpop.xlane.xlu0 %713  ;;  %v1849_v39 = vpop.eup %1848 }
 0x195   :  { %v769_v16 = vmax.f32 %v714_v7, 1e-24  ;;  %1108 = vmatmul.mubr.bf16.gmra.mxu1 %v858_v14  ;;  %1301 = vmatmul.mubr.bf16.gmra.mxu0 %v858_v14  ;;  %v829_v32 = vmul.f32 %v1849_v39, %v2378_v35 }
 0x196   :  { %1117 = vmatprep.mubr.bf16.mxu1 %v1926_v15  ;;  %1310 = vmatprep.mubr.bf16.mxu0 %v1926_v15 }
 0x197   :  { %1856 = vrsqrt.f32 %v769_v16 }
 0x198   :  { %v1851_v48 = vpop.eup %1850  ;;  %v716_v59 = vpop.xlane.xlu1 %715 }
 0x199   :  { %v770_v1 = vmax.f32 %v716_v59, 1e-24  ;;  %v830_v20 = vmul.f32 %v1851_v48, %v2385_v40 }
 0x19b   :  { %1858 = vrsqrt.f32 %v770_v1  ;;  %v859_v29 = vpack.c.bf16 %v830_v20, %v829_v32 }
 0x19c   :  { %v718_v33 = vpop.xlane.xlu0 %717  ;;  %v1853_v38 = vpop.eup %1852 }
 0x19d   :  { %v771_v37 = vmax.f32 %v718_v33, 1e-24  ;;  %1118 = vmatmul.mubr.bf16.gmra.mxu1 %v859_v29  ;;  %1311 = vmatmul.mubr.bf16.gmra.mxu0 %v859_v29  ;;  %v831_v18 = vmul.f32 %v1853_v38, %v2406_v49 }
 0x19e   :  { %1127 = vmatprep.mubr.bf16.mxu1 %v1926_v15  ;;  %1320 = vmatprep.mubr.bf16.mxu0 %v1926_v15 }
 0x19f   :  { %1860 = vrsqrt.f32 %v771_v37 }
 0x1a0   :  { %v1855_v4 = vpop.eup %1854  ;;  %v720_v5 = vpop.xlane.xlu1 %719 }
 0x1a1   :  { %v772_v12 = vmax.f32 %v720_v5, 1e-24  ;;  %v832_v35 = vmul.f32 %v1855_v4, %v2413_v55 }
 0x1a3   :  { %1862 = vrsqrt.f32 %v772_v12  ;;  %v860_v40 = vpack.c.bf16 %v832_v35, %v831_v18 }
 0x1a4   :  { %v722_v23 = vpop.xlane.xlu0 %721  ;;  %v1857_v27 = vpop.eup %1856 }
 0x1a5   :  { %v773_v45 = vmax.f32 %v722_v23, 1e-24  ;;  %1128 = vmatmul.mubr.bf16.gmra.mxu1 %v860_v40  ;;  %1321 = vmatmul.mubr.bf16.gmra.mxu0 %v860_v40  ;;  %v833_v36 = vmul.f32 %v1857_v27, %v2434_v2 }
 0x1a6   :  { %1137 = vmatprep.mubr.bf16.mxu1 %v1926_v15  ;;  %1330 = vmatprep.mubr.bf16.mxu0 %v1926_v15 }
 0x1a7   :  { %1864 = vrsqrt.f32 %v773_v45 }
 0x1a8   :  { %v1859_v46 = vpop.eup %1858  ;;  %v724_v52 = vpop.xlane.xlu1 %723 }
 0x1a9   :  { %v774_v53 = vmax.f32 %v724_v52, 1e-24  ;;  %v834_v49 = vmul.f32 %v1859_v46, %v2443_v13 }
 0x1ab   :  { %1866 = vrsqrt.f32 %v774_v53  ;;  %v861_v55 = vpack.c.bf16 %v834_v49, %v833_v36 }
 0x1ac   :  { %v726_v42 = vpop.xlane.xlu0 %725  ;;  %v1861_v56 = vpop.eup %1860 }
 0x1ad   :  { %v775_v50 = vmax.f32 %v726_v42, 1e-24  ;;  %1138 = vmatmul.mubr.bf16.gmra.mxu1 %v861_v55  ;;  %1331 = vmatmul.mubr.bf16.gmra.mxu0 %v861_v55  ;;  %v835_v3 = vmul.f32 %v1861_v56, %v2450_v22 }
 0x1ae   :  { %1147 = vmatprep.mubr.bf16.mxu1 %v1926_v15  ;;  %1340 = vmatprep.mubr.bf16.mxu0 %v1926_v15 }
 0x1af   :  { %1868 = vrsqrt.f32 %v775_v50 }
 0x1b0   :  { %v1863_v47 = vpop.eup %1862  ;;  %v728_v62 = vpop.xlane.xlu1 %727 }
 0x1b1   :  { %v776_v61 = vmax.f32 %v728_v62, 1e-24  ;;  %v836_v2 = vmul.f32 %v1863_v47, %v2455_v26  ;;  %v730_v13 = vpop.xlane.xlu0 %729 }
 0x1b2   :  { %v777_v8 = vmax.f32 %v730_v13, 1e-24 }
 0x1b3   :  { %1870 = vrsqrt.f32 %v776_v61  ;;  %v862_v6 = vpack.c.bf16 %v836_v2, %v835_v3 }
 0x1b4   :  { %v732_v10 = vpop.xlane.xlu1 %731  ;;  %v1865_v14 = vpop.eup %1864 }
 0x1b5   :  { %v778_v60 = vmax.f32 %v732_v10, 1e-24  ;;  %1148 = vmatmul.mubr.bf16.gmra.mxu1 %v862_v6  ;;  %1341 = vmatmul.mubr.bf16.gmra.mxu0 %v862_v6  ;;  %v837_v22 = vmul.f32 %v1865_v14, %v2460_v28  ;;  %v734_v39 = vpop.xlane.xlu0 %733 }
 0x1b6   :  { %1157 = vmatprep.mubr.bf16.mxu1 %v1926_v15  ;;  %1350 = vmatprep.mubr.bf16.mxu0 %v1926_v15  ;;  %v779_v1 = vmax.f32 %v734_v39, 1e-24 }
 0x1b7   :  { %1872 = vrsqrt.f32 %v778_v60 }
 0x1b8   :  { %v1867_v7 = vpop.eup %1866  ;;  %v736_v16 = vpop.xlane.xlu1 %735  ;;  %1874 = vrsqrt.f32 %v777_v8 }
 0x1b9   :  { %v838_v26 = vmul.f32 %v1867_v7, %v2467_v54  ;;  %v780_v48 = vmax.f32 %v736_v16, 1e-24  ;;  %v738_v54 = vpop.xlane.xlu0 %737 }
 0x1ba   :  { %v781_v5 = vmax.f32 %v738_v54, 1e-24 }
 0x1bb   :  { %v863_v59 = vpack.c.bf16 %v838_v26, %v837_v22  ;;  %1876 = vrsqrt.f32 %v780_v48 }
 0x1bc   :  { %v1869_v32 = vpop.eup %1868  ;;  %v740_v29 = vpop.xlane.xlu1 %739  ;;  %1878 = vrsqrt.f32 %v779_v1 }
 0x1bd   :  { %1158 = vmatmul.mubr.bf16.gmra.mxu1 %v863_v59  ;;  %1351 = vmatmul.mubr.bf16.gmra.mxu0 %v863_v59  ;;  %v839_v33 = vmul.f32 %v1869_v32, %v2477_v11  ;;  %v782_v37 = vmax.f32 %v740_v29, 1e-24 }
 0x1be   :  { %1167 = vmatprep.mubr.bf16.mxu1 %v1926_v15  ;;  %1360 = vmatprep.mubr.bf16.mxu0 %v1926_v15 }
 0x1bf   :  { %1880 = vrsqrt.f32 %v782_v37 }
 0x1c0   :  { %v1871_v20 = vpop.eup %1870  ;;  %v744_v35 = vpop.xlane.xlu1 %743  ;;  %1882 = vrsqrt.f32 %v781_v5 }
 0x1c1   :  { %v840_v28 = vmul.f32 %v1871_v20, %v2491_v44  ;;  %v742_v44 = vpop.xlane.xlu0 %741  ;;  %v784_v40 = vmax.f32 %v744_v35, 1e-24 }
 0x1c2   :  { %v783_v27 = vmax.f32 %v742_v44, 1e-24 }
 0x1c3   :  { %v864_v38 = vpack.c.bf16 %v840_v28, %v839_v33  ;;  %1884 = vrsqrt.f32 %v784_v40 }
 0x1c4   :  { %v1873_v4 = vpop.eup %1872  ;;  %1886 = vrsqrt.f32 %v783_v27 }
 0x1c5   :  { %1168 = vmatmul.mubr.bf16.gmra.mxu1 %v864_v38  ;;  %1361 = vmatmul.mubr.bf16.gmra.mxu0 %v864_v38  ;;  %v1875_v12 = vpop.eup %1874  ;;  %v842_v18 = vmul.f32 %v1873_v4, %v2496_v21  ;;  %v748_v21 = vpop.xlane.xlu1 %747 }
 0x1c6   :  { %1177 = vmatprep.mubr.bf16.mxu1 %v1926_v15  ;;  %1370 = vmatprep.mubr.bf16.mxu0 %v1926_v15  ;;  %v841_v11 = vmul.f32 %v1875_v12, %v2472_v63  ;;  %v746_v63 = vpop.xlane.xlu0 %745  ;;  %v786_v36 = vmax.f32 %v748_v21, 1e-24 }
 0x1c7   :  { %v785_v42 = vmax.f32 %v746_v63, 1e-24 }
 0x1c8   :  { %v865_v23 = vpack.c.bf16 %v842_v18, %v841_v11  ;;  %v1877_v45 = vpop.eup %1876  ;;  %1888 = vrsqrt.f32 %v786_v36 }
 0x1c9   :  { %v1879_v46 = vpop.eup %1878  ;;  %v844_v52 = vmul.f32 %v1877_v45, %v2501_v19  ;;  %v752_v19 = vpop.xlane.xlu1 %751  ;;  %1890 = vrsqrt.f32 %v785_v42 }
 0x1ca   :  { %v843_v53 = vmul.f32 %v1879_v46, %v2486_v17  ;;  %v750_v17 = vpop.xlane.xlu0 %749  ;;  %v788_v62 = vmax.f32 %v752_v19, 1e-24 }
 0x1cb   :  { %v787_v2 = vmax.f32 %v750_v17, 1e-24 }
 0x1cc   :  { %v866_v49 = vpack.c.bf16 %v844_v52, %v843_v53  ;;  %v1881_v55 = vpop.eup %1880  ;;  %1892 = vrsqrt.f32 %v788_v62 }
 0x1cd   :  { %1178 = vmatmul.mubr.bf16.gmra.mxu1 %v865_v23  ;;  %1371 = vmatmul.mubr.bf16.gmra.mxu0 %v865_v23  ;;  %v1883_v50 = vpop.eup %1882  ;;  %v846_v56 = vmul.f32 %v1881_v55, %v2513_v41  ;;  %v756_v41 = vpop.xlane.xlu1 %755  ;;  %1894 = vrsqrt.f32 %v787_v2 }
 0x1ce   :  { %1187 = vmatprep.mubr.bf16.mxu1 %v1926_v15  ;;  %1380 = vmatprep.mubr.bf16.mxu0 %v1926_v15  ;;  %v845_v47 = vmul.f32 %v1883_v50, %v2506_v30  ;;  %v754_v30 = vpop.xlane.xlu0 %753  ;;  %v790_v8 = vmax.f32 %v756_v41, 1e-24 }
 0x1cf   :  { %v789_v7 = vmax.f32 %v754_v30, 1e-24 }
 0x1d0   :  { %v867_v61 = vpack.c.bf16 %v846_v56, %v845_v47  ;;  %v1885_v3 = vpop.eup %1884  ;;  %1896 = vrsqrt.f32 %v790_v8 }
 0x1d1   :  { %v1887_v13 = vpop.eup %1886  ;;  %v848_v6 = vmul.f32 %v1885_v3, %v2527_v57  ;;  %v760_v57 = vpop.xlane.xlu1 %759  ;;  %1898 = vrsqrt.f32 %v789_v7 }
 0x1d2   :  { %v847_v10 = vmul.f32 %v1887_v13, %v2516_v43  ;;  %v758_v43 = vpop.xlane.xlu0 %757  ;;  %v792_v39 = vmax.f32 %v760_v57, 1e-24 }
 0x1d3   :  { %v791_v1 = vmax.f32 %v758_v43, 1e-24 }
 0x1d4   :  { %v868_v60 = vpack.c.bf16 %v848_v6, %v847_v10  ;;  %1900 = vrsqrt.f32 %v792_v39 }
 0x1d5   :  { %1188 = vmatmul.mubr.bf16.gmra.mxu1 %v866_v49  ;;  %1381 = vmatmul.mubr.bf16.gmra.mxu0 %v866_v49  ;;  %v1889_v14 = vpop.eup %1888  ;;  %1902 = vrsqrt.f32 %v791_v1 }
 0x1d6   :  { %1197 = vmatprep.mubr.bf16.mxu1 %v1926_v15  ;;  %1390 = vmatprep.mubr.bf16.mxu0 %v1926_v15  ;;  %v1891_v16 = vpop.eup %1890  ;;  %v850_v22 = vmul.f32 %v1889_v14, %v2533_v25 }
 0x1d7   :  { %v849_v26 = vmul.f32 %v1891_v16, %v2530_v9 }
 0x1d9   :  { %v869_v48 = vpack.c.bf16 %v850_v22, %v849_v26  ;;  %v1893_v59 = vpop.eup %1892 }
 0x1da   :  { %v1895_v32 = vpop.eup %1894  ;;  %v852_v20 = vmul.f32 %v1893_v59, %v2543_v0 }
 0x1db   :  { %v851_v25 = vmul.f32 %v1895_v32, %v2536_v58 }
 0x1dd   :  { %1198 = vmatmul.mubr.bf16.gmra.mxu1 %v867_v61  ;;  %1391 = vmatmul.mubr.bf16.gmra.mxu0 %v867_v61  ;;  %v870_v29 = vpack.c.bf16 %v852_v20, %v851_v25  ;;  %v1897_v9 = vpop.eup %1896 }
 0x1de   :  { %1207 = vmatprep.mubr.bf16.mxu1 %v1926_v15  ;;  %1400 = vmatprep.mubr.bf16.mxu0 %v1926_v15  ;;  %v1899_v33 = vpop.eup %1898  ;;  %v854_v28 = vmul.f32 %v1897_v9, %v2557_v31 }
 0x1df   :  { %v853_v54 = vmul.f32 %v1899_v33, %v2546_v24 }
 0x1e1   :  { %v871_v37 = vpack.c.bf16 %v854_v28, %v853_v54  ;;  %v1901_v38 = vpop.eup %1900 }
 0x1e2   :  { %v1903_v0 = vpop.eup %1902  ;;  %v856_v58 = vmul.f32 %v1901_v38, %v2563_v51 }
 0x1e3   :  { %v855_v4 = vmul.f32 %v1903_v0, %v2560_v34 }
 0x1e5   :  { %1208 = vmatmul.mubr.bf16.gmra.mxu1 %v868_v60  ;;  %1401 = vmatmul.mubr.bf16.gmra.mxu0 %v868_v60  ;;  %v872_v5 = vpack.c.bf16 %v856_v58, %v855_v4 }
 0x1e6   :  { %1217 = vmatprep.mubr.bf16.mxu1 %v1926_v15  ;;  %1410 = vmatprep.mubr.bf16.mxu0 %v1926_v15 }
 0x1ed   :  { %1218 = vmatmul.mubr.bf16.gmra.mxu1 %v869_v48  ;;  %1411 = vmatmul.mubr.bf16.gmra.mxu0 %v869_v48 }
 0x1ee   :  { %1227 = vmatprep.mubr.bf16.mxu1 %v1926_v15  ;;  %1420 = vmatprep.mubr.bf16.mxu0 %v1926_v15 }
 0x1f5   :  { %1228 = vmatmul.mubr.bf16.gmra.mxu1 %v870_v29  ;;  %1421 = vmatmul.mubr.bf16.gmra.mxu0 %v870_v29 }
 0x1f6   :  { %1237 = vmatprep.mubr.bf16.mxu1 %v1926_v15  ;;  %1430 = vmatprep.mubr.bf16.mxu0 %v1926_v15 }
 0x1fd   :  { %1238 = vmatmul.mubr.bf16.gmra.mxu1 %v871_v37  ;;  %1431 = vmatmul.mubr.bf16.gmra.mxu0 %v871_v37 }
 0x1fe   :  { %1247 = vmatprep.mubr.bf16.mxu1 %v1926_v15  ;;  %1440 = vmatprep.mubr.bf16.mxu0 %v1926_v15 }
 0x205   :  { %1248 = vmatmul.mubr.bf16.gmra.mxu1 %v872_v5  ;;  %1441 = vmatmul.mubr.bf16.gmra.mxu0 %v872_v5 }
 0x24d   :  { %v1099_v12 = vpop.f32.mrf.mxu1  ;;  %v1292_v31 = vpop.f32.mrf.mxu0 }
 0x24e   :  { %1451 = vst [vmem:[#allocation2] sm:$0xff] %v1099_v12  ;;  %1453 = vst [vmem:[#allocation2 + $0x10] sm:$0xff] %v1292_v31 }
 0x24f   :  { %v1101_v24 = vpop.f32.mrf.mxu1  ;;  %v1294_v18 = vpop.f32.mrf.mxu0 }
 0x250   :  { %1452 = vst [vmem:[#allocation2 + $0x8] sm:$0xff] %v1101_v24  ;;  %1454 = vst [vmem:[#allocation2 + $0x18] sm:$0xff] %v1294_v18 }
 0x251   :  { %v1103_v35 = vpop.f32.mrf.mxu1  ;;  %v1296_v11 = vpop.f32.mrf.mxu0 }
 0x252   :  { %1455 = vst [vmem:[#allocation2 + $0x20] sm:$0xff] %v1103_v35  ;;  %1457 = vst [vmem:[#allocation2 + $0x30] sm:$0xff] %v1296_v11 }
 0x253   :  { %v1105_v15 = vpop.f32.mrf.mxu1  ;;  %v1298_v44 = vpop.f32.mrf.mxu0 }
 0x254   :  { %1456 = vst [vmem:[#allocation2 + $0x28] sm:$0xff] %v1105_v15  ;;  %1458 = vst [vmem:[#allocation2 + $0x38] sm:$0xff] %v1298_v44 }
 0x255   :  { %v1109_v34 = vpop.f32.mrf.mxu1  ;;  %v1302_v51 = vpop.f32.mrf.mxu0 }
 0x256   :  { %1459 = vst [vmem:[#allocation2 + $0x40] sm:$0xff] %v1109_v34  ;;  %1461 = vst [vmem:[#allocation2 + $0x50] sm:$0xff] %v1302_v51 }
 0x257   :  { %v1111_v40 = vpop.f32.mrf.mxu1  ;;  %v1304_v23 = vpop.f32.mrf.mxu0 }
 0x258   :  { %1460 = vst [vmem:[#allocation2 + $0x48] sm:$0xff] %v1111_v40  ;;  %1462 = vst [vmem:[#allocation2 + $0x58] sm:$0xff] %v1304_v23 }
 0x259   :  { %v1113_v45 = vpop.f32.mrf.mxu1  ;;  %v1306_v27 = vpop.f32.mrf.mxu0 }
 0x25a   :  { %1463 = vst [vmem:[#allocation2 + $0x60] sm:$0xff] %v1113_v45  ;;  %1465 = vst [vmem:[#allocation2 + $0x70] sm:$0xff] %v1306_v27 }
 0x25b   :  { %v1115_v46 = vpop.f32.mrf.mxu1  ;;  %v1308_v52 = vpop.f32.mrf.mxu0 }
 0x25c   :  { %1464 = vst [vmem:[#allocation2 + $0x68] sm:$0xff] %v1115_v46  ;;  %1466 = vst [vmem:[#allocation2 + $0x78] sm:$0xff] %v1308_v52 }
 0x25d   :  { %v1119_v21 = vpop.f32.mrf.mxu1  ;;  %v1312_v53 = vpop.f32.mrf.mxu0 }
 0x25e   :  { %1467 = vst [vmem:[#allocation2 + $0x80] sm:$0xff] %v1119_v21  ;;  %1469 = vst [vmem:[#allocation2 + $0x90] sm:$0xff] %v1312_v53 }
 0x25f   :  { %v1121_v63 = vpop.f32.mrf.mxu1  ;;  %v1314_v36 = vpop.f32.mrf.mxu0 }
 0x260   :  { %1468 = vst [vmem:[#allocation2 + $0x88] sm:$0xff] %v1121_v63  ;;  %1470 = vst [vmem:[#allocation2 + $0x98] sm:$0xff] %v1314_v36 }
 0x261   :  { %v1123_v49 = vpop.f32.mrf.mxu1  ;;  %v1316_v55 = vpop.f32.mrf.mxu0 }
 0x262   :  { %1471 = vst [vmem:[#allocation2 + $0xa0] sm:$0xff] %v1123_v49  ;;  %1473 = vst [vmem:[#allocation2 + $0xb0] sm:$0xff] %v1316_v55 }
 0x263   :  { %v1125_v42 = vpop.f32.mrf.mxu1  ;;  %v1318_v50 = vpop.f32.mrf.mxu0 }
 0x264   :  { %1472 = vst [vmem:[#allocation2 + $0xa8] sm:$0xff] %v1125_v42  ;;  %1474 = vst [vmem:[#allocation2 + $0xb8] sm:$0xff] %v1318_v50 }
 0x265   :  { %v1129_v56 = vpop.f32.mrf.mxu1  ;;  %v1322_v19 = vpop.f32.mrf.mxu0 }
 0x266   :  { %1475 = vst [vmem:[#allocation2 + $0xc0] sm:$0xff] %v1129_v56  ;;  %1477 = vst [vmem:[#allocation2 + $0xd0] sm:$0xff] %v1322_v19 }
 0x267   :  { %v1131_v47 = vpop.f32.mrf.mxu1  ;;  %v1324_v17 = vpop.f32.mrf.mxu0 }
 0x268   :  { %1476 = vst [vmem:[#allocation2 + $0xc8] sm:$0xff] %v1131_v47  ;;  %1478 = vst [vmem:[#allocation2 + $0xd8] sm:$0xff] %v1324_v17 }
 0x269   :  { %v1133_v62 = vpop.f32.mrf.mxu1  ;;  %v1326_v61 = vpop.f32.mrf.mxu0 }
 0x26a   :  { %1479 = vst [vmem:[#allocation2 + $0xe0] sm:$0xff] %v1133_v62  ;;  %1481 = vst [vmem:[#allocation2 + $0xf0] sm:$0xff] %v1326_v61 }
 0x26b   :  { %v1135_v3 = vpop.f32.mrf.mxu1  ;;  %v1328_v2 = vpop.f32.mrf.mxu0 }
 0x26c   :  { %1480 = vst [vmem:[#allocation2 + $0xe8] sm:$0xff] %v1135_v3  ;;  %1482 = vst [vmem:[#allocation2 + $0xf8] sm:$0xff] %v1328_v2 }
 0x26d   :  { %v1139_v13 = vpop.f32.mrf.mxu1  ;;  %v1332_v6 = vpop.f32.mrf.mxu0 }
 0x26e   :  { %1483 = vst [vmem:[#allocation2 + $0x100] sm:$0xff] %v1139_v13  ;;  %1485 = vst [vmem:[#allocation2 + $0x110] sm:$0xff] %v1332_v6 }
 0x26f   :  { %v1141_v41 = vpop.f32.mrf.mxu1  ;;  %v1334_v10 = vpop.f32.mrf.mxu0 }
 0x270   :  { %1484 = vst [vmem:[#allocation2 + $0x108] sm:$0xff] %v1141_v41  ;;  %1486 = vst [vmem:[#allocation2 + $0x118] sm:$0xff] %v1334_v10 }
 0x271   :  { %v1143_v30 = vpop.f32.mrf.mxu1  ;;  %v1336_v8 = vpop.f32.mrf.mxu0 }
 0x272   :  { %1487 = vst [vmem:[#allocation2 + $0x120] sm:$0xff] %v1143_v30  ;;  %1489 = vst [vmem:[#allocation2 + $0x130] sm:$0xff] %v1336_v8 }
 0x273   :  { %v1145_v60 = vpop.f32.mrf.mxu1  ;;  %v1338_v14 = vpop.f32.mrf.mxu0 }
 0x274   :  { %1488 = vst [vmem:[#allocation2 + $0x128] sm:$0xff] %v1145_v60  ;;  %1490 = vst [vmem:[#allocation2 + $0x138] sm:$0xff] %v1338_v14 }
 0x275   :  { %v1149_v7 = vpop.f32.mrf.mxu1  ;;  %v1342_v16 = vpop.f32.mrf.mxu0 }
 0x276   :  { %1491 = vst [vmem:[#allocation2 + $0x140] sm:$0xff] %v1149_v7  ;;  %1493 = vst [vmem:[#allocation2 + $0x150] sm:$0xff] %v1342_v16 }
 0x277   :  { %v1151_v22 = vpop.f32.mrf.mxu1  ;;  %v1344_v57 = vpop.f32.mrf.mxu0 }
 0x278   :  { %1492 = vst [vmem:[#allocation2 + $0x148] sm:$0xff] %v1151_v22  ;;  %1494 = vst [vmem:[#allocation2 + $0x158] sm:$0xff] %v1344_v57 }
 0x279   :  { %v1153_v26 = vpop.f32.mrf.mxu1  ;;  %v1346_v43 = vpop.f32.mrf.mxu0 }
 0x27a   :  { %1495 = vst [vmem:[#allocation2 + $0x160] sm:$0xff] %v1153_v26  ;;  %1497 = vst [vmem:[#allocation2 + $0x170] sm:$0xff] %v1346_v43 }
 0x27b   :  { %v1155_v39 = vpop.f32.mrf.mxu1  ;;  %v1348_v48 = vpop.f32.mrf.mxu0 }
 0x27c   :  { %1496 = vst [vmem:[#allocation2 + $0x168] sm:$0xff] %v1155_v39  ;;  %1498 = vst [vmem:[#allocation2 + $0x178] sm:$0xff] %v1348_v48 }
 0x27d   :  { %v1159_v59 = vpop.f32.mrf.mxu1  ;;  %v1352_v1 = vpop.f32.mrf.mxu0 }
 0x27e   :  { %1499 = vst [vmem:[#allocation2 + $0x180] sm:$0xff] %v1159_v59  ;;  %1501 = vst [vmem:[#allocation2 + $0x190] sm:$0xff] %v1352_v1 }
 0x27f   :  { %v1161_v32 = vpop.f32.mrf.mxu1  ;;  %v1354_v20 = vpop.f32.mrf.mxu0 }
 0x280   :  { %1500 = vst [vmem:[#allocation2 + $0x188] sm:$0xff] %v1161_v32  ;;  %1502 = vst [vmem:[#allocation2 + $0x198] sm:$0xff] %v1354_v20 }
 0x281   :  { %v1163_v25 = vpop.f32.mrf.mxu1  ;;  %v1356_v29 = vpop.f32.mrf.mxu0 }
 0x282   :  { %1503 = vst [vmem:[#allocation2 + $0x1a0] sm:$0xff] %v1163_v25  ;;  %1505 = vst [vmem:[#allocation2 + $0x1b0] sm:$0xff] %v1356_v29 }
 0x283   :  { %v1165_v9 = vpop.f32.mrf.mxu1  ;;  %v1358_v33 = vpop.f32.mrf.mxu0 }
 0x284   :  { %1504 = vst [vmem:[#allocation2 + $0x1a8] sm:$0xff] %v1165_v9  ;;  %1506 = vst [vmem:[#allocation2 + $0x1b8] sm:$0xff] %v1358_v33 }
 0x285   :  { %v1169_v28 = vpop.f32.mrf.mxu1  ;;  %v1362_v54 = vpop.f32.mrf.mxu0 }
 0x286   :  { %1507 = vst [vmem:[#allocation2 + $0x1c0] sm:$0xff] %v1169_v28  ;;  %1509 = vst [vmem:[#allocation2 + $0x1d0] sm:$0xff] %v1362_v54 }
 0x287   :  { %v1171_v37 = vpop.f32.mrf.mxu1  ;;  %v1364_v38 = vpop.f32.mrf.mxu0 }
 0x288   :  { %1508 = vst [vmem:[#allocation2 + $0x1c8] sm:$0xff] %v1171_v37  ;;  %1510 = vst [vmem:[#allocation2 + $0x1d8] sm:$0xff] %v1364_v38 }
 0x289   :  { %v1173_v0 = vpop.f32.mrf.mxu1  ;;  %v1366_v58 = vpop.f32.mrf.mxu0 }
 0x28a   :  { %1511 = vst [vmem:[#allocation2 + $0x1e0] sm:$0xff] %v1173_v0  ;;  %1513 = vst [vmem:[#allocation2 + $0x1f0] sm:$0xff] %v1366_v58 }
 0x28b   :  { %v1175_v4 = vpop.f32.mrf.mxu1  ;;  %v1368_v5 = vpop.f32.mrf.mxu0 }
 0x28c   :  { %1512 = vst [vmem:[#allocation2 + $0x1e8] sm:$0xff] %v1175_v4  ;;  %1514 = vst [vmem:[#allocation2 + $0x1f8] sm:$0xff] %v1368_v5 }
 0x28d   :  { %v1179_v12 = vpop.f32.mrf.mxu1  ;;  %v1372_v31 = vpop.f32.mrf.mxu0 }
 0x28e   :  { %1515 = vst [vmem:[#allocation2 + $0x200] sm:$0xff] %v1179_v12  ;;  %1517 = vst [vmem:[#allocation2 + $0x210] sm:$0xff] %v1372_v31 }
 0x28f   :  { %v1181_v24 = vpop.f32.mrf.mxu1  ;;  %v1374_v18 = vpop.f32.mrf.mxu0 }
 0x290   :  { %1516 = vst [vmem:[#allocation2 + $0x208] sm:$0xff] %v1181_v24  ;;  %1518 = vst [vmem:[#allocation2 + $0x218] sm:$0xff] %v1374_v18 }
 0x291   :  { %v1183_v35 = vpop.f32.mrf.mxu1  ;;  %v1376_v11 = vpop.f32.mrf.mxu0 }
 0x292   :  { %1519 = vst [vmem:[#allocation2 + $0x220] sm:$0xff] %v1183_v35  ;;  %1521 = vst [vmem:[#allocation2 + $0x230] sm:$0xff] %v1376_v11 }
 0x293   :  { %v1185_v15 = vpop.f32.mrf.mxu1  ;;  %v1378_v44 = vpop.f32.mrf.mxu0 }
 0x294   :  { %1520 = vst [vmem:[#allocation2 + $0x228] sm:$0xff] %v1185_v15  ;;  %1522 = vst [vmem:[#allocation2 + $0x238] sm:$0xff] %v1378_v44 }
 0x295   :  { %v1189_v34 = vpop.f32.mrf.mxu1  ;;  %v1382_v51 = vpop.f32.mrf.mxu0 }
 0x296   :  { %1523 = vst [vmem:[#allocation2 + $0x240] sm:$0xff] %v1189_v34  ;;  %1525 = vst [vmem:[#allocation2 + $0x250] sm:$0xff] %v1382_v51 }
 0x297   :  { %v1191_v40 = vpop.f32.mrf.mxu1  ;;  %v1384_v23 = vpop.f32.mrf.mxu0 }
 0x298   :  { %1524 = vst [vmem:[#allocation2 + $0x248] sm:$0xff] %v1191_v40  ;;  %1526 = vst [vmem:[#allocation2 + $0x258] sm:$0xff] %v1384_v23 }
 0x299   :  { %v1193_v45 = vpop.f32.mrf.mxu1  ;;  %v1386_v27 = vpop.f32.mrf.mxu0 }
 0x29a   :  { %1527 = vst [vmem:[#allocation2 + $0x260] sm:$0xff] %v1193_v45  ;;  %1529 = vst [vmem:[#allocation2 + $0x270] sm:$0xff] %v1386_v27 }
 0x29b   :  { %v1195_v46 = vpop.f32.mrf.mxu1  ;;  %v1388_v52 = vpop.f32.mrf.mxu0 }
 0x29c   :  { %1528 = vst [vmem:[#allocation2 + $0x268] sm:$0xff] %v1195_v46  ;;  %1530 = vst [vmem:[#allocation2 + $0x278] sm:$0xff] %v1388_v52 }
 0x29d   :  { %v1199_v21 = vpop.f32.mrf.mxu1  ;;  %v1392_v53 = vpop.f32.mrf.mxu0 }
 0x29e   :  { %1531 = vst [vmem:[#allocation2 + $0x280] sm:$0xff] %v1199_v21  ;;  %1533 = vst [vmem:[#allocation2 + $0x290] sm:$0xff] %v1392_v53 }
 0x29f   :  { %v1201_v63 = vpop.f32.mrf.mxu1  ;;  %v1394_v36 = vpop.f32.mrf.mxu0 }
 0x2a0   :  { %1532 = vst [vmem:[#allocation2 + $0x288] sm:$0xff] %v1201_v63  ;;  %1534 = vst [vmem:[#allocation2 + $0x298] sm:$0xff] %v1394_v36 }
 0x2a1   :  { %v1203_v49 = vpop.f32.mrf.mxu1  ;;  %v1396_v55 = vpop.f32.mrf.mxu0 }
 0x2a2   :  { %1535 = vst [vmem:[#allocation2 + $0x2a0] sm:$0xff] %v1203_v49  ;;  %1537 = vst [vmem:[#allocation2 + $0x2b0] sm:$0xff] %v1396_v55 }
 0x2a3   :  { %v1205_v42 = vpop.f32.mrf.mxu1  ;;  %v1398_v50 = vpop.f32.mrf.mxu0 }
 0x2a4   :  { %1536 = vst [vmem:[#allocation2 + $0x2a8] sm:$0xff] %v1205_v42  ;;  %1538 = vst [vmem:[#allocation2 + $0x2b8] sm:$0xff] %v1398_v50 }
 0x2a5   :  { %v1209_v56 = vpop.f32.mrf.mxu1  ;;  %v1402_v19 = vpop.f32.mrf.mxu0 }
 0x2a6   :  { %1539 = vst [vmem:[#allocation2 + $0x2c0] sm:$0xff] %v1209_v56  ;;  %1541 = vst [vmem:[#allocation2 + $0x2d0] sm:$0xff] %v1402_v19 }
 0x2a7   :  { %v1211_v47 = vpop.f32.mrf.mxu1  ;;  %v1404_v17 = vpop.f32.mrf.mxu0 }
 0x2a8   :  { %1540 = vst [vmem:[#allocation2 + $0x2c8] sm:$0xff] %v1211_v47  ;;  %1542 = vst [vmem:[#allocation2 + $0x2d8] sm:$0xff] %v1404_v17 }
 0x2a9   :  { %v1213_v62 = vpop.f32.mrf.mxu1  ;;  %v1406_v61 = vpop.f32.mrf.mxu0 }
 0x2aa   :  { %1543 = vst [vmem:[#allocation2 + $0x2e0] sm:$0xff] %v1213_v62  ;;  %1545 = vst [vmem:[#allocation2 + $0x2f0] sm:$0xff] %v1406_v61 }
 0x2ab   :  { %v1215_v3 = vpop.f32.mrf.mxu1  ;;  %v1408_v2 = vpop.f32.mrf.mxu0 }
 0x2ac   :  { %1544 = vst [vmem:[#allocation2 + $0x2e8] sm:$0xff] %v1215_v3  ;;  %1546 = vst [vmem:[#allocation2 + $0x2f8] sm:$0xff] %v1408_v2 }
 0x2ad   :  { %v1219_v13 = vpop.f32.mrf.mxu1  ;;  %v1412_v6 = vpop.f32.mrf.mxu0 }
 0x2ae   :  { %1547 = vst [vmem:[#allocation2 + $0x300] sm:$0xff] %v1219_v13  ;;  %1549 = vst [vmem:[#allocation2 + $0x310] sm:$0xff] %v1412_v6 }
 0x2af   :  { %v1221_v41 = vpop.f32.mrf.mxu1  ;;  %v1414_v10 = vpop.f32.mrf.mxu0 }
 0x2b0   :  { %1548 = vst [vmem:[#allocation2 + $0x308] sm:$0xff] %v1221_v41  ;;  %1550 = vst [vmem:[#allocation2 + $0x318] sm:$0xff] %v1414_v10 }
 0x2b1   :  { %v1223_v30 = vpop.f32.mrf.mxu1  ;;  %v1416_v8 = vpop.f32.mrf.mxu0 }
 0x2b2   :  { %1551 = vst [vmem:[#allocation2 + $0x320] sm:$0xff] %v1223_v30  ;;  %1553 = vst [vmem:[#allocation2 + $0x330] sm:$0xff] %v1416_v8 }
 0x2b3   :  { %v1225_v60 = vpop.f32.mrf.mxu1  ;;  %v1418_v14 = vpop.f32.mrf.mxu0 }
 0x2b4   :  { %1552 = vst [vmem:[#allocation2 + $0x328] sm:$0xff] %v1225_v60  ;;  %1554 = vst [vmem:[#allocation2 + $0x338] sm:$0xff] %v1418_v14 }
 0x2b5   :  { %v1229_v7 = vpop.f32.mrf.mxu1  ;;  %v1422_v16 = vpop.f32.mrf.mxu0 }
 0x2b6   :  { %1555 = vst [vmem:[#allocation2 + $0x340] sm:$0xff] %v1229_v7  ;;  %1557 = vst [vmem:[#allocation2 + $0x350] sm:$0xff] %v1422_v16 }
 0x2b7   :  { %v1231_v22 = vpop.f32.mrf.mxu1  ;;  %v1424_v57 = vpop.f32.mrf.mxu0 }
 0x2b8   :  { %1556 = vst [vmem:[#allocation2 + $0x348] sm:$0xff] %v1231_v22  ;;  %1558 = vst [vmem:[#allocation2 + $0x358] sm:$0xff] %v1424_v57 }
 0x2b9   :  { %v1233_v26 = vpop.f32.mrf.mxu1  ;;  %v1426_v43 = vpop.f32.mrf.mxu0 }
 0x2ba   :  { %1559 = vst [vmem:[#allocation2 + $0x360] sm:$0xff] %v1233_v26  ;;  %1561 = vst [vmem:[#allocation2 + $0x370] sm:$0xff] %v1426_v43 }
 0x2bb   :  { %v1235_v39 = vpop.f32.mrf.mxu1  ;;  %v1428_v48 = vpop.f32.mrf.mxu0 }
 0x2bc   :  { %1560 = vst [vmem:[#allocation2 + $0x368] sm:$0xff] %v1235_v39  ;;  %1562 = vst [vmem:[#allocation2 + $0x378] sm:$0xff] %v1428_v48 }
 0x2bd   :  { %v1239_v59 = vpop.f32.mrf.mxu1  ;;  %v1432_v1 = vpop.f32.mrf.mxu0 }
 0x2be   :  { %1563 = vst [vmem:[#allocation2 + $0x380] sm:$0xff] %v1239_v59  ;;  %1565 = vst [vmem:[#allocation2 + $0x390] sm:$0xff] %v1432_v1 }
 0x2bf   :  { %v1241_v32 = vpop.f32.mrf.mxu1  ;;  %v1434_v20 = vpop.f32.mrf.mxu0 }
 0x2c0   :  { %1564 = vst [vmem:[#allocation2 + $0x388] sm:$0xff] %v1241_v32  ;;  %1566 = vst [vmem:[#allocation2 + $0x398] sm:$0xff] %v1434_v20 }
 0x2c1   :  { %v1243_v25 = vpop.f32.mrf.mxu1  ;;  %v1436_v29 = vpop.f32.mrf.mxu0 }
 0x2c2   :  { %1567 = vst [vmem:[#allocation2 + $0x3a0] sm:$0xff] %v1243_v25  ;;  %1569 = vst [vmem:[#allocation2 + $0x3b0] sm:$0xff] %v1436_v29 }
 0x2c3   :  { %v1245_v9 = vpop.f32.mrf.mxu1  ;;  %v1438_v33 = vpop.f32.mrf.mxu0 }
 0x2c4   :  { %1568 = vst [vmem:[#allocation2 + $0x3a8] sm:$0xff] %v1245_v9  ;;  %1570 = vst [vmem:[#allocation2 + $0x3b8] sm:$0xff] %v1438_v33 }
 0x2c5   :  { %v1249_v28 = vpop.f32.mrf.mxu1  ;;  %v1442_v54 = vpop.f32.mrf.mxu0 }
 0x2c6   :  { %1571 = vst [vmem:[#allocation2 + $0x3c0] sm:$0xff] %v1249_v28  ;;  %1573 = vst [vmem:[#allocation2 + $0x3d0] sm:$0xff] %v1442_v54 }
 0x2c7   :  { %v1251_v37 = vpop.f32.mrf.mxu1  ;;  %v1444_v38 = vpop.f32.mrf.mxu0 }
 0x2c8   :  { %1572 = vst [vmem:[#allocation2 + $0x3c8] sm:$0xff] %v1251_v37  ;;  %1574 = vst [vmem:[#allocation2 + $0x3d8] sm:$0xff] %v1444_v38 }
 0x2c9   :  { %v1253_v0 = vpop.f32.mrf.mxu1  ;;  %v1446_v58 = vpop.f32.mrf.mxu0 }
 0x2ca   :  { %1575 = vst [vmem:[#allocation2 + $0x3e0] sm:$0xff] %v1253_v0  ;;  %1577 = vst [vmem:[#allocation2 + $0x3f0] sm:$0xff] %v1446_v58 }
 0x2cb   :  { %v1255_v4 = vpop.f32.mrf.mxu1  ;;  %v1448_v5 = vpop.f32.mrf.mxu0 }
 0x2cc   :  { %1576 = vst [vmem:[#allocation2 + $0x3e8] sm:$0xff] %v1255_v4  ;;  %1578 = vst [vmem:[#allocation2 + $0x3f8] sm:$0xff] %v1448_v5 }
 0x2cd   :  { %1915 = shalt.err (!%p1912_p4)
}
 0x2ce   :  { %s1928_s26 = smov 512   ;;  %s1929_s27 = smov 32  }
 0x2cf   :  { %1590 = dma.vmem_to_hbm [thread:$0]  %s1585_s24, 16384, %s2642_s6, [#allocation3], %s1928_s26, %s1928_s26, %s1929_s27  }
 0x2d0   :  { %1924 = dma.done.wait [#allocation3], 16384  }
 0x2d1   :  { %1925 = vsyncadd [#allocation3], 4294950912 }
 0x2d2   :  { %1594 = vsyncpa [#allocation3], 1 }

</bundles_post_ra>
